<compile_context>
chip_gen: v5e
topology: v5e:2x2
jax: 0.10.0
libtpu: 0.0.40
codegen_flags: <defaults>
</compile_context>

<pallas_src>
import jax
import jax.numpy as jnp
from jax.experimental import pallas as pl
from jax.experimental.pallas import tpu as pltpu


def _make_kernel(with_outputs, acc_in_out):
    """Build the fused linear (model_outputs) + MSE-partial (compute_loss) body.

    Ref order (pallas_call convention: inputs, outputs, scratch):
      with_outputs & acc_in_out : x, w, b, out, lpart            (no scratch)
      with_outputs & !acc_in_out: x, w, b, out, lpart, acc
      loss-only                 : x, w, b,      lpart, acc
    """

    def kernel(x_ref, w_ref, b_ref, *rest):
        if with_outputs:
            if acc_in_out:
                out_ref, lpart_ref = rest
                acc_ref = out_ref  # f32 output block doubles as the accumulator
            else:
                out_ref, lpart_ref, acc_ref = rest
        else:
            out_ref = None
            lpart_ref, acc_ref = rest

        k = pl.program_id(2)

        # --- init accumulator at the start of the reduction axis -------------
        @pl.when(k == 0)
        def _():
            acc_ref[...] = jnp.zeros_like(acc_ref)

        # --- model_outputs hot loop: bf16 MXU operands, f32 accumulation -----
        acc_ref[...] += jnp.dot(
            x_ref[...], w_ref[...], preferred_element_type=jnp.float32
        )

        # --- finalize: bias add, optional output writeback, loss partial -----
        @pl.when(k == pl.num_programs(2) - 1)
        def _():
            # bias added once, outside the K loop; finalize math stays in f32
            y = acc_ref[...].astype(jnp.float32) + b_ref[...]

            if with_outputs:
                out_ref[...] = y.astype(out_ref.dtype)

            # compute_loss: raw per-block partial sum of squares, written as a
            # lane-dense (8,128) tile (unmasked store).  No in-kernel scaling;
            # the wrapper reads one element per tile and applies 1/n.
            lpart_ref[...] = jnp.broadcast_to(
                jnp.sum(y * y), lpart_ref.shape
            ).astype(jnp.float32)

    return kernel


def base_model_forward(x, w, b, evaluation=False, *, tm=256, tn=256, tk=512):
    """Mirrors BaseModel.forward: returns loss, or (loss, outputs) if evaluation."""
    B, D_in = x.shape
    D_out = w.shape[1]
    out_dtype = x.dtype

    # bf16 MXU operands (f32 accumulation in the kernel): halves x/W DMA bytes
    # and unlocks full bf16 MXU throughput.  Bias stays f32 for the finalize.
    x_mxu = x if x.dtype == jnp.bfloat16 else x.astype(jnp.bfloat16)
    w_mxu = w if w.dtype == jnp.bfloat16 else w.astype(jnp.bfloat16)
    b_f32 = b.astype(jnp.float32).reshape(1, D_out)

    # Clamp tiles to the actual dims; full-dim blocks are always legal, so
    # small problems collapse to a (1,1,1) grid (no reduction bookkeeping).
    tm = min(tm, B)
    tn = min(tn, D_out)
    tk = min(tk, D_in)
    assert B % tm == 0 and D_out % tn == 0 and D_in % tk == 0, (
        "dims must be divisible by the chosen tiles"
    )
    gm, gn, gk = B // tm, D_out // tn, D_in // tk

    in_specs = [
        pl.BlockSpec((tm, tk), lambda i, j, k: (i, k)),   # x  (bf16)
        pl.BlockSpec((tk, tn), lambda i, j, k: (k, j)),   # W  (bf16)
        pl.BlockSpec((1, tn), lambda i, j, k: (0, j)),    # b  (f32, per col block)
    ]
    # Per-(i,j)-block loss partials: one lane-dense (8,128) tile per block.
    lpart_shape = jax.ShapeDtypeStruct((gm * 8, gn * 128), jnp.float32)
    lpart_spec = pl.BlockSpec((8, 128), lambda i, j, k: (i, j))

    compiler_params = pltpu.CompilerParams(
        dimension_semantics=("parallel", "parallel", "arbitrary"),
        vmem_limit_bytes=48 * 1024 * 1024,  # explicit budget (v7x has 64 MiB phys)
    )

    bytes_accessed = (
        x_mxu.size * x_mxu.dtype.itemsize
        + w_mxu.size * w_mxu.dtype.itemsize
        + b_f32.size * 4
        + gm * 8 * gn * 128 * 4
        + (B * D_out * jnp.dtype(out_dtype).itemsize if evaluation else 0)
    )
    cost_estimate = pl.CostEstimate(
        flops=2 * B * D_in * D_out, transcendentals=0, bytes_accessed=bytes_accessed
    )

    if evaluation:
        # f32 outputs accumulate directly into out_ref (resident across k);
        # other output dtypes keep a dedicated f32 accumulator scratch.
        acc_in_out = jnp.dtype(out_dtype) == jnp.dtype(jnp.float32)
        scratch = [] if acc_in_out else [pltpu.VMEM((tm, tn), jnp.float32)]
        outputs, lpart = pl.pallas_call(
            _make_kernel(True, acc_in_out),
            out_shape=(
                jax.ShapeDtypeStruct((B, D_out), out_dtype),  # outputs
                lpart_shape,                                   # loss partials
            ),
            grid_spec=pltpu.PrefetchScalarGridSpec(
                num_scalar_prefetch=0,
                grid=(gm, gn, gk),
                in_specs=in_specs,
                out_specs=(
                    pl.BlockSpec((tm, tn), lambda i, j, k: (i, j)),
                    lpart_spec,
                ),
                scratch_shapes=scratch,
            ),
            compiler_params=compiler_params,
            cost_estimate=cost_estimate,
        )(x_mxu, w_mxu, b_f32)
    else:
        # Training path: loss-only kernel, no (B, D_out) HBM writeback.
        lpart = pl.pallas_call(
            _make_kernel(False, False),
            out_shape=lpart_shape,
            grid_spec=pltpu.PrefetchScalarGridSpec(
                num_scalar_prefetch=0,
                grid=(gm, gn, gk),
                in_specs=in_specs,
                out_specs=lpart_spec,
                scratch_shapes=[pltpu.VMEM((tm, tn), jnp.float32)],
            ),
            compiler_params=compiler_params,
            cost_estimate=cost_estimate,
        )(x_mxu, w_mxu, b_f32)
        outputs = None

    # One raw partial per (i,j) block (strided pick), then the 1/n scaling.
    loss = jnp.sum(lpart[::8, ::128]) * (1.0 / float(B * D_out))

    if evaluation:
        return loss, outputs
    return loss


if __name__ == "__main__":
    key = jax.random.PRNGKey(0)
    k_x, k_w, k_b = jax.random.split(key, 3)

    # Small but MXU/lane-aligned shapes.  With the default (clamped) tiles the
    # whole problem runs in a single grid step; the third call below forces a
    # (2,2,2) grid to also exercise tiled accumulation + finalize.
    B, D_in, D_out = 256, 512, 256
    x = jax.random.normal(k_x, (B, D_in), dtype=jnp.float32)
    w = jax.random.normal(k_w, (D_in, D_out), dtype=jnp.float32) * 0.02
    b = jax.random.normal(k_b, (1, D_out), dtype=jnp.float32) * 0.02

    # Default path: forward(inputs) -> loss (loss-only kernel, no outputs writeback)
    loss = base_model_forward(x, w, b, evaluation=False)

    # Evaluation path: forward(inputs, evaluation=True) -> (loss, outputs)
    loss_e, outs = base_model_forward(x, w, b, evaluation=True)

    # Tiled-grid path (explicit smaller tiles -> grid (2,2,2)).
    loss_t, outs_t = base_model_forward(
        x, w, b, evaluation=True, tm=128, tn=128, tk=256
    )

    jax.block_until_ready((loss, loss_e, outs, loss_t, outs_t))

    # Plain-JAX reference of the same realization (bf16 matmul like the kernel).
    ref_out = (x.astype(jnp.bfloat16) @ w.astype(jnp.bfloat16)).astype(jnp.float32) + b
    ref_loss = jnp.mean(ref_out * ref_out)
    assert jnp.allclose(outs, ref_out, rtol=2e-2, atol=2e-2), "outputs mismatch"
    assert jnp.allclose(outs_t, ref_out, rtol=2e-2, atol=2e-2), "outputs mismatch (tiled)"
    assert jnp.allclose(loss_e, ref_loss, rtol=2e-2, atol=2e-2), "loss mismatch (eval)"
    assert jnp.allclose(loss, ref_loss, rtol=2e-2, atol=2e-2), "loss mismatch (train)"
    assert jnp.allclose(loss_t, ref_loss, rtol=2e-2, atol=2e-2), "loss mismatch (tiled)"

    print("KERNEL_OK")
</pallas_src>

<mosaic_0001>
module attributes {stable_mosaic.version = 11 : i64} {
  func.func @kernel(%arg0: i32, %arg1: i32, %arg2: i32, %arg3: memref<256x512xbf16, #tpu.memory_space<vmem>>, %arg4: memref<512x256xbf16, #tpu.memory_space<vmem>>, %arg5: memref<1x256xf32, #tpu.memory_space<vmem>>, %arg6: memref<8x128xf32, #tpu.memory_space<vmem>>, %arg7: memref<256x256xf32, #tpu.memory_space<vmem>>) attributes {dimension_semantics = [#tpu.dimension_semantics<parallel>, #tpu.dimension_semantics<parallel>, #tpu.dimension_semantics<arbitrary>], iteration_bounds = array<i64: 1, 1, 1>, scalar_prefetch = 0 : i64, scratch_operands = 1 : i64, tpu.core_type = #tpu.core_type<tc>, window_params = [{transform_indices = @transform_0, window_bounds = array<i64: 256, 512>}, {transform_indices = @transform_1, window_bounds = array<i64: 512, 256>}, {transform_indices = @transform_2, window_bounds = array<i64: 1, 256>}, {transform_indices = @transform_3, window_bounds = array<i64: 8, 128>}]} {
    %c0_i32 = arith.constant 0 : i32
    %0 = arith.cmpi eq, %arg2, %c0_i32 : i32
    %1 = arith.extui %0 : i1 to i32
    %c0_i32_0 = arith.constant 0 : i32
    %2 = arith.cmpi ne, %1, %c0_i32_0 : i32
    scf.if %2 {
      %cst_10 = arith.constant 0.000000e+00 : f32
      %12 = vector.broadcast %cst_10 : f32 to vector<256x256xf32>
      %c0_11 = arith.constant 0 : index
      %c0_12 = arith.constant 0 : index
      %13 = vector.load %arg7[%c0_11, %c0_12] : memref<256x256xf32, #tpu.memory_space<vmem>>, vector<256x256xf32>
      tpu.vector_store %arg7[%c0_11, %c0_12], %12 {strides = array<i32>} : memref<256x256xf32, #tpu.memory_space<vmem>>, vector<256x256xf32>,
    } else {
    }
    %c0 = arith.constant 0 : index
    %c0_1 = arith.constant 0 : index
    %3 = vector.load %arg7[%c0, %c0_1] : memref<256x256xf32, #tpu.memory_space<vmem>>, vector<256x256xf32>
    %c0_2 = arith.constant 0 : index
    %c0_3 = arith.constant 0 : index
    %4 = vector.load %arg3[%c0_2, %c0_3] : memref<256x512xbf16, #tpu.memory_space<vmem>>, vector<256x512xbf16>
    %c0_4 = arith.constant 0 : index
    %c0_5 = arith.constant 0 : index
    %5 = vector.load %arg4[%c0_4, %c0_5] : memref<512x256xbf16, #tpu.memory_space<vmem>>, vector<512x256xbf16>
    %cst = arith.constant dense<0.000000e+00> : vector<256x256xf32>
    %6 = tpu.matmul %4, %5, %cst {dimension_numbers = #tpu.dot_dimension_numbers<[1], [0], [0], [1], [0, 0, 1, 1], [], []>} : vector<256x512xbf16>, vector<512x256xbf16>, vector<256x256xf32> -> vector<256x256xf32>
    %7 = arith.addf %3, %6 : vector<256x256xf32>
    %c0_6 = arith.constant 0 : index
    %c0_7 = arith.constant 0 : index
    %8 = vector.load %arg7[%c0_6, %c0_7] : memref<256x256xf32, #tpu.memory_space<vmem>>, vector<256x256xf32>
    tpu.vector_store %arg7[%c0_6, %c0_7], %7 {strides = array<i32>} : memref<256x256xf32, #tpu.memory_space<vmem>>, vector<256x256xf32>,
    %c0_i32_8 = arith.constant 0 : i32
    %9 = arith.cmpi eq, %arg2, %c0_i32_8 : i32
    %10 = arith.extui %9 : i1 to i32
    %c0_i32_9 = arith.constant 0 : i32
    %11 = arith.cmpi ne, %10, %c0_i32_9 : i32
    scf.if %11 {
      %c0_10 = arith.constant 0 : index
      %c0_11 = arith.constant 0 : index
      %12 = vector.load %arg7[%c0_10, %c0_11] : memref<256x256xf32, #tpu.memory_space<vmem>>, vector<256x256xf32>
      %c0_12 = arith.constant 0 : index
      %c0_13 = arith.constant 0 : index
      %13 = vector.load %arg5[%c0_12, %c0_13] : memref<1x256xf32, #tpu.memory_space<vmem>>, vector<1x256xf32>
      %14 = vector.broadcast %13 : vector<1x256xf32> to vector<256x256xf32>
      %15 = arith.addf %12, %14 : vector<256x256xf32>
      %16 = arith.mulf %15, %15 : vector<256x256xf32>
      %17 = vector.shape_cast %16 : vector<256x256xf32> to vector<1x256x256xf32>
      %cst_14 = arith.constant dense<0.000000e+00> : vector<1xf32>
      %18 = vector.multi_reduction <add>, %17, %cst_14 [1, 2] : vector<1x256x256xf32> to vector<1xf32>
      %19 = vector.shape_cast %18 : vector<1xf32> to vector<1x1x1xf32>
      %20 = vector.extract %19[0, 0, 0] : f32 from vector<1x1x1xf32>
      %21 = vector.broadcast %20 : f32 to vector<8x128xf32>
      %c0_15 = arith.constant 0 : index
      %c0_16 = arith.constant 0 : index
      %22 = vector.load %arg6[%c0_15, %c0_16] : memref<8x128xf32, #tpu.memory_space<vmem>>, vector<8x128xf32>
      tpu.vector_store %arg6[%c0_15, %c0_16], %21 {strides = array<i32>} : memref<8x128xf32, #tpu.memory_space<vmem>>, vector<8x128xf32>,
    } else {
    }
    return
  }
  func.func @transform_0(%arg0: i32, %arg1: i32, %arg2: i32) -> (i32, i32) {
    %c0_i32 = arith.constant 0 : i32
    return %arg0, %arg2 : i32, i32
  }
  func.func @transform_1(%arg0: i32, %arg1: i32, %arg2: i32) -> (i32, i32) {
    %c0_i32 = arith.constant 0 : i32
    return %arg2, %arg1 : i32, i32
  }
  func.func @transform_2(%arg0: i32, %arg1: i32, %arg2: i32) -> (i32, i32) {
    %c0_i32 = arith.constant 0 : i32
    %c0_i32_0 = arith.constant 0 : i32
    return %c0_i32, %arg1 : i32, i32
  }
  func.func @transform_3(%arg0: i32, %arg1: i32, %arg2: i32) -> (i32, i32) {
    %c0_i32 = arith.constant 0 : i32
    return %arg0, %arg1 : i32, i32
  }
}

</mosaic_0001>

<bundles_post_ra>
// kernel: tpu_custom_call.1
= control target key start
LH: loop header
LB: loop body
LE: loop exit
PB: predicated region body
PF: predicated region fallthrough
CT: control target
= control target key end

     0   :  { %8 = vsyncpa [#allocation4], 0  ;;  %s3305_s0 = inlined_call_operand.hbm [shape: bf16[256,512], index: 0, kind: input, shape index: {}]   ;;  %s3306_s1 = inlined_call_operand.hbm [shape: bf16[512,256], index: 1, kind: input, shape index: {}]   ;;  %s3307_s2 = inlined_call_operand.hbm [shape: f32[1,256], index: 2, kind: input, shape index: {}]   ;;  %s3308_s3 = inlined_call_operand.hbm [shape: f32[8,128], index: 3, kind: output, shape index: {}]  }
   0x1   :  { %9 = vsyncpa [#allocation7], 0  ;;  %s28_s14 = sshll.u32 %s3306_s1, 4  ;;  %s29_s14 = int_to_ptr.hbm [resolvable:$true] %s28_s14 }
   0x2   :  { %10 = vsyncpa [#allocation5], 0  ;;  %s2845_s15 = smov [#allocation6]   ;;  %s15_s19 = sshll.u32 %s3305_s0, 4  ;;  %s16_s19 = int_to_ptr.hbm [resolvable:$true] %s15_s19 }
   0x3   :  { %s30_s16 = sshll.u32 %s2845_s15, 4  ;;  %s2846_s20 = smov 128   ;;  %s31_s16 = int_to_ptr.vmem [resolvable:$true] %s30_s16 }
   0x4   :  { %s2847_s21 = smov 8   ;;  %s2848_s22 = smov [#allocation3]  }
   0x5   :  { %36 = dma.hbm_to_vmem [thread:$0]  %s29_s14, 8192, %s31_s16, [#allocation7], %s2846_s20, %s2846_s20, %s2847_s21  }
   0x6   :  { %s17_s23 = sshll.u32 %s2848_s22, 4  ;;  %s2849_s24 = smov 256   ;;  %s18_s23 = int_to_ptr.vmem [resolvable:$true] %s17_s23 }
   0x7   :  { %s2850_s25 = smov 16   ;;  %s42_s27 = sshll.u32 %s3307_s2, 4  ;;  %s43_s27 = int_to_ptr.hbm [resolvable:$true] %s42_s27 }
   0x8   :  { %23 = dma.hbm_to_vmem [thread:$0]  %s16_s19, 8192, %s18_s23, [#allocation4], %s2849_s24, %s2849_s24, %s2850_s25  }
   0x9   :  { %s2851_s28 = smov [#allocation8]  }
   0xa   :  { %s44_s29 = sshll.u32 %s2851_s28, 4  ;;  %s45_s29 = int_to_ptr.vmem [resolvable:$true] %s44_s29 }
   0xb   :  { %47 = dma.hbm_to_vmem [thread:$0]  %s43_s27, 32, %s45_s29, [#allocation7]  }
   0xc   :  { %2839 = dma.done.wait [#allocation4], 8192  }
   0xd   :  { %2840 = vsyncadd [#allocation4], 4294959104 }
   0xe   :  { %2841 = dma.done.wait [#allocation7], 8224  }
   0xf   :  { %2842 = vsyncadd [#allocation7], 4294959072  ;;  %v2407_v0 = vld [vmem:[#allocation6 + $0x70] sm:$0xf]  ;;  %v2684_v1 = vld [vmem:[#allocation6 + $0x74] sm:$0xf0] }
  0x10   :  { %v2471_v2 = vld [vmem:[#allocation6 + $0xf0] sm:$0xf]  ;;  %v2408_v3 = vor.u32 %v2684_v1, %v2407_v0  ;;  %v2700_v4 = vld [vmem:[#allocation6 + $0xf4] sm:$0xf0]  ;;  %v2399_v11 = vld [vmem:[#allocation6 + $0x60] sm:$0xf] }
  0x11   :  { %v2535_v5 = vld [vmem:[#allocation6 + $0x170] sm:$0xf]  ;;  %v2716_v6 = vld [vmem:[#allocation6 + $0x174] sm:$0xf0]  ;;  %v2472_v7 = vor.u32 %v2700_v4, %v2471_v2  ;;  %v2682_v13 = vld [vmem:[#allocation6 + $0x64] sm:$0xf0] }
  0x12   :  { %v2536_v8 = vor.u32 %v2716_v6, %v2535_v5  ;;  %v2599_v9 = vld [vmem:[#allocation6 + $0x1f0] sm:$0xf]  ;;  %v2732_v10 = vld [vmem:[#allocation6 + $0x1f4] sm:$0xf0]  ;;  %960 = vmatpush.bf16.msra.mxu0 %v2408_v3  ;;  %v2463_v14 = vld [vmem:[#allocation6 + $0xe0] sm:$0xf]  ;;  %v2400_v16 = vor.u32 %v2682_v13, %v2399_v11 }
  0x13   :  { %v2600_v12 = vor.u32 %v2732_v10, %v2599_v9  ;;  %v2698_v15 = vld [vmem:[#allocation6 + $0xe4] sm:$0xf0]  ;;  %1049 = vmatpush.bf16.msra.mxu1 %v2472_v7  ;;  %v2527_v18 = vld [vmem:[#allocation6 + $0x160] sm:$0xf]  ;;  %v2391_v23 = vld [vmem:[#allocation6 + $0x50] sm:$0xf] }
  0x14   :  { %1138 = vmatpush.bf16.msra.mxu2 %v2536_v8  ;;  %v2464_v17 = vor.u32 %v2698_v15, %v2463_v14  ;;  %v2714_v19 = vld [vmem:[#allocation6 + $0x164] sm:$0xf0]  ;;  %v2591_v20 = vld [vmem:[#allocation6 + $0x1e0] sm:$0xf]  ;;  %v2680_v24 = vld [vmem:[#allocation6 + $0x54] sm:$0xf0] }
  0x15   :  { %1227 = vmatpush.bf16.msra.mxu3 %v2600_v12  ;;  %v2528_v21 = vor.u32 %v2714_v19, %v2527_v18  ;;  %v2730_v22 = vld [vmem:[#allocation6 + $0x1e4] sm:$0xf0]  ;;  %v2455_v26 = vld [vmem:[#allocation6 + $0xd0] sm:$0xf]  ;;  %v2696_v27 = vld [vmem:[#allocation6 + $0xd4] sm:$0xf0]  ;;  %v2392_v29 = vor.u32 %v2680_v24, %v2391_v23 }
  0x16   :  { %v2592_v25 = vor.u32 %v2730_v22, %v2591_v20  ;;  %v2519_v28 = vld [vmem:[#allocation6 + $0x150] sm:$0xf]  ;;  %961 = vmatpush.bf16.msra.mxu0 %v2400_v16  ;;  %v2712_v30 = vld [vmem:[#allocation6 + $0x154] sm:$0xf0]  ;;  %v2456_v33 = vor.u32 %v2696_v27, %v2455_v26  ;;  %v2383_v35 = vld [vmem:[#allocation6 + $0x40] sm:$0xf] }
  0x17   :  { %v2583_v31 = vld [vmem:[#allocation6 + $0x1d0] sm:$0xf]  ;;  %v2728_v32 = vld [vmem:[#allocation6 + $0x1d4] sm:$0xf0]  ;;  %1050 = vmatpush.bf16.msra.mxu1 %v2464_v17  ;;  %v2520_v34 = vor.u32 %v2712_v30, %v2519_v28  ;;  %v2678_v36 = vld [vmem:[#allocation6 + $0x44] sm:$0xf0] }
  0x18   :  { %1139 = vmatpush.bf16.msra.mxu2 %v2528_v21  ;;  %v2447_v37 = vld [vmem:[#allocation6 + $0xc0] sm:$0xf]  ;;  %v2584_v38 = vor.u32 %v2728_v32, %v2583_v31  ;;  %v2694_v39 = vld [vmem:[#allocation6 + $0xc4] sm:$0xf0]  ;;  %v2384_v44 = vor.u32 %v2678_v36, %v2383_v35  ;;  %v2375_v47 = vld [vmem:[#allocation6 + $0x30] sm:$0xf] }
  0x19   :  { %1228 = vmatpush.bf16.msra.mxu3 %v2592_v25  ;;  %v2511_v40 = vld [vmem:[#allocation6 + $0x140] sm:$0xf]  ;;  %v2710_v41 = vld [vmem:[#allocation6 + $0x144] sm:$0xf0]  ;;  %v2448_v45 = vor.u32 %v2694_v39, %v2447_v37  ;;  %v2676_v48 = vld [vmem:[#allocation6 + $0x34] sm:$0xf0] }
  0x1a   :  { %v2575_v42 = vld [vmem:[#allocation6 + $0x1c0] sm:$0xf]  ;;  %v2726_v43 = vld [vmem:[#allocation6 + $0x1c4] sm:$0xf0]  ;;  %962 = vmatpush.bf16.msra.mxu0 %v2392_v29  ;;  %v2512_v46 = vor.u32 %v2710_v41, %v2511_v40  ;;  %v2439_v49 = vld [vmem:[#allocation6 + $0xb0] sm:$0xf]  ;;  %v2376_v56 = vor.u32 %v2676_v48, %v2375_v47 }
  0x1b   :  { %1051 = vmatpush.bf16.msra.mxu1 %v2456_v33  ;;  %v2576_v50 = vor.u32 %v2726_v43, %v2575_v42  ;;  %v2692_v51 = vld [vmem:[#allocation6 + $0xb4] sm:$0xf0]  ;;  %v2503_v52 = vld [vmem:[#allocation6 + $0x130] sm:$0xf]  ;;  %v2367_v59 = vld [vmem:[#allocation6 + $0x20] sm:$0xf] }
  0x1c   :  { %1140 = vmatpush.bf16.msra.mxu2 %v2520_v34  ;;  %v2708_v53 = vld [vmem:[#allocation6 + $0x134] sm:$0xf0]  ;;  %v2567_v54 = vld [vmem:[#allocation6 + $0x1b0] sm:$0xf]  ;;  %v2440_v57 = vor.u32 %v2692_v51, %v2439_v49  ;;  %v2674_v60 = vld [vmem:[#allocation6 + $0x24] sm:$0xf0] }
  0x1d   :  { %1229 = vmatpush.bf16.msra.mxu3 %v2584_v38  ;;  %v2724_v55 = vld [vmem:[#allocation6 + $0x1b4] sm:$0xf0]  ;;  %v2504_v58 = vor.u32 %v2708_v53, %v2503_v52  ;;  %v2431_v61 = vld [vmem:[#allocation6 + $0xa0] sm:$0xf]  ;;  %v2690_v63 = vld [vmem:[#allocation6 + $0xa4] sm:$0xf0]  ;;  %v2368_v4 = vor.u32 %v2674_v60, %v2367_v59 }
  0x1e   :  { %963 = vmatpush.bf16.msra.mxu0 %v2384_v44  ;;  %v2568_v62 = vor.u32 %v2724_v55, %v2567_v54  ;;  %v2495_v0 = vld [vmem:[#allocation6 + $0x120] sm:$0xf]  ;;  %v2706_v1 = vld [vmem:[#allocation6 + $0x124] sm:$0xf0]  ;;  %v2432_v5 = vor.u32 %v2690_v63, %v2431_v61  ;;  %v2359_v7 = vld [vmem:[#allocation6 + $0x10] sm:$0xf] }
  0x1f   :  { %1052 = vmatpush.bf16.msra.mxu1 %v2448_v45  ;;  %v2559_v2 = vld [vmem:[#allocation6 + $0x1a0] sm:$0xf]  ;;  %v2722_v3 = vld [vmem:[#allocation6 + $0x1a4] sm:$0xf0]  ;;  %v2496_v6 = vor.u32 %v2706_v1, %v2495_v0  ;;  %v2672_v8 = vld [vmem:[#allocation6 + $0x14] sm:$0xf0] }
  0x20   :  { %1141 = vmatpush.bf16.msra.mxu2 %v2512_v46  ;;  %v2423_v9 = vld [vmem:[#allocation6 + $0x90] sm:$0xf]  ;;  %v2560_v10 = vor.u32 %v2722_v3, %v2559_v2  ;;  %v2688_v11 = vld [vmem:[#allocation6 + $0x94] sm:$0xf0]  ;;  %v2351_v16 = vld [vmem:[#allocation6] sm:$0xf]  ;;  %v2360_v17 = vor.u32 %v2672_v8, %v2359_v7 }
  0x21   :  { %1230 = vmatpush.bf16.msra.mxu3 %v2576_v50  ;;  %v2487_v12 = vld [vmem:[#allocation6 + $0x110] sm:$0xf]  ;;  %v2704_v13 = vld [vmem:[#allocation6 + $0x114] sm:$0xf0]  ;;  %v2670_v18 = vld [vmem:[#allocation6 + $0x4] sm:$0xf0]  ;;  %v2424_v21 = vor.u32 %v2688_v11, %v2423_v9 }
  0x22   :  { %964 = vmatpush.bf16.msra.mxu0 %v2376_v56  ;;  %v2551_v14 = vld [vmem:[#allocation6 + $0x190] sm:$0xf]  ;;  %v2720_v15 = vld [vmem:[#allocation6 + $0x194] sm:$0xf0]  ;;  %v2415_v19 = vld [vmem:[#allocation6 + $0x80] sm:$0xf]  ;;  %v2488_v22 = vor.u32 %v2704_v13, %v2487_v12  ;;  %v2352_v33 = vor.u32 %v2670_v18, %v2351_v16 }
  0x23   :  { %1053 = vmatpush.bf16.msra.mxu1 %v2440_v57  ;;  %v2686_v20 = vld [vmem:[#allocation6 + $0x84] sm:$0xf0]  ;;  %v2479_v23 = vld [vmem:[#allocation6 + $0x100] sm:$0xf]  ;;  %v2552_v26 = vor.u32 %v2720_v15, %v2551_v14  ;;  %v2607_v29 = vld [vmem:[#allocation3 + $0xc] sm:$0xf0] }
  0x24   :  { %1142 = vmatpush.bf16.msra.mxu2 %v2504_v58  ;;  %v2702_v24 = vld [vmem:[#allocation6 + $0x104] sm:$0xf0]  ;;  %v2543_v25 = vld [vmem:[#allocation6 + $0x180] sm:$0xf]  ;;  %v2605_v30 = vld [vmem:[#allocation3 + $0x4] sm:$0xf]  ;;  %v2416_v37 = vor.u32 %v2686_v20, %v2415_v19 }
  0x25   :  { %1231 = vmatpush.bf16.msra.mxu3 %v2568_v62  ;;  %v2718_v27 = vld [vmem:[#allocation6 + $0x184] sm:$0xf0]  ;;  %v2095_v28 = vld [vmem:[#allocation3] sm:$0xf]  ;;  %v2715_v31 = vld [vmem:[#allocation6 + $0x174] sm:$0xf]  ;;  %v2480_v38 = vor.u32 %v2702_v24, %v2479_v23 }
  0x26   :  { %965 = vmatpush.bf16.msra.mxu0 %v2368_v4  ;;  %v2537_v32 = vld [vmem:[#allocation6 + $0x178] sm:$0xf0]  ;;  %v2097_v34 = vld [vmem:[#allocation3 + $0x10] sm:$0xf0]  ;;  %v2103_v39 = vld [vmem:[#allocation3 + $0x8] sm:$0xf]  ;;  %v2544_v42 = vor.u32 %v2718_v27, %v2543_v25  ;;  %v2882_v47 = vor.u32 %v2607_v29, %v2095_v28 }
  0x27   :  { %1054 = vmatpush.bf16.msra.mxu1 %v2432_v5  ;;  %v2731_v35 = vld [vmem:[#allocation6 + $0x1f4] sm:$0xf]  ;;  %v2601_v36 = vld [vmem:[#allocation6 + $0x1f8] sm:$0xf0]  ;;  %v2608_v40 = vld [vmem:[#allocation3 + $0x14] sm:$0xf0]  ;;  %v2540_v44 = vor.u32 %v2715_v31, %v2537_v32  ;;  %v2884_v51 = vor.u32 %v2605_v30, %v2097_v34 }
  0x28   :  { %1143 = vmatpush.bf16.msra.mxu2 %v2496_v6  ;;  %v2606_v41 = vld [vmem:[#allocation3 + $0xc] sm:$0xf]  ;;  %v2105_v43 = vld [vmem:[#allocation3 + $0x18] sm:$0xf0]  ;;  %v2683_v45 = vld [vmem:[#allocation6 + $0x74] sm:$0xf]  ;;  %v2604_v48 = vor.u32 %v2731_v35, %v2601_v36  ;;  %v2886_v52 = vor.u32 %v2608_v40, %v2103_v39 }
  0x29   :  { %1232 = vmatpush.bf16.msra.mxu3 %v2560_v10  ;;  %v2409_v46 = vld [vmem:[#allocation6 + $0x78] sm:$0xf0]  ;;  %v2699_v49 = vld [vmem:[#allocation6 + $0xf4] sm:$0xf]  ;;  %v2888_v53 = vor.u32 %v2606_v41, %v2105_v43  ;;  %v2713_v56 = vld [vmem:[#allocation6 + $0x164] sm:$0xf] }
  0x2a   :  { %966 = vmatpush.bf16.msra.mxu0 %v2360_v17  ;;  %v2473_v50 = vld [vmem:[#allocation6 + $0xf8] sm:$0xf0]  ;;  %v2412_v54 = vor.u32 %v2683_v45, %v2409_v46  ;;  %v2529_v57 = vld [vmem:[#allocation6 + $0x168] sm:$0xf0]  ;;  %v2729_v58 = vld [vmem:[#allocation6 + $0x1e4] sm:$0xf] }
  0x2b   :  { %1055 = vmatpush.bf16.msra.mxu1 %v2424_v21  ;;  %v2476_v55 = vor.u32 %v2699_v49, %v2473_v50  ;;  %v2532_v59 = vor.u32 %v2713_v56, %v2529_v57  ;;  %v2593_v60 = vld [vmem:[#allocation6 + $0x1e8] sm:$0xf0]  ;;  %v2681_v61 = vld [vmem:[#allocation6 + $0x64] sm:$0xf]  ;;  %v2111_v4 = vld [vmem:[#allocation3 + $0x20] sm:$0xf] }
  0x2c   :  { %1144 = vmatpush.bf16.msra.mxu2 %v2488_v22  ;;  %v2401_v62 = vld [vmem:[#allocation6 + $0x68] sm:$0xf0]  ;;  %v2596_v63 = vor.u32 %v2729_v58, %v2593_v60  ;;  %v2697_v1 = vld [vmem:[#allocation6 + $0xe4] sm:$0xf]  ;;  %v2611_v5 = vld [vmem:[#allocation3 + $0x2c] sm:$0xf0] }
  0x2d   :  { %1233 = vmatpush.bf16.msra.mxu3 %v2552_v26  ;;  %v2404_v0 = vor.u32 %v2681_v61, %v2401_v62  ;;  %v2465_v2 = vld [vmem:[#allocation6 + $0xe8] sm:$0xf0]  ;;  %v2609_v6 = vld [vmem:[#allocation3 + $0x24] sm:$0xf]  ;;  %v2113_v7 = vld [vmem:[#allocation3 + $0x30] sm:$0xf0]  ;;  %v2894_v12 = vor.u32 %v2611_v5, %v2111_v4 }
  0x2e   :  { %967 = vmatpush.bf16.msra.mxu0 %v2352_v33  ;;  %v2468_v3 = vor.u32 %v2697_v1, %v2465_v2  ;;  %v2119_v8 = vld [vmem:[#allocation3 + $0x28] sm:$0xf]  ;;  %v2612_v9 = vld [vmem:[#allocation3 + $0x34] sm:$0xf0]  ;;  %v2610_v10 = vld [vmem:[#allocation3 + $0x2c] sm:$0xf]  ;;  %v2896_v13 = vor.u32 %v2609_v6, %v2113_v7 }
  0x2f   :  { %1056 = vmatpush.bf16.msra.mxu1 %v2416_v37  ;;  %v2121_v11 = vld [vmem:[#allocation3 + $0x38] sm:$0xf0]  ;;  %v2898_v14 = vor.u32 %v2612_v9, %v2119_v8  ;;  %v2127_v16 = vld [vmem:[#allocation3 + $0x40] sm:$0xf]  ;;  %v2615_v17 = vld [vmem:[#allocation3 + $0x4c] sm:$0xf0] }
  0x30   :  { %1145 = vmatpush.bf16.msra.mxu2 %v2480_v38  ;;  %v2900_v15 = vor.u32 %v2610_v10, %v2121_v11  ;;  %v2613_v18 = vld [vmem:[#allocation3 + $0x44] sm:$0xf]  ;;  %v2129_v19 = vld [vmem:[#allocation3 + $0x50] sm:$0xf0]  ;;  %v2135_v20 = vld [vmem:[#allocation3 + $0x48] sm:$0xf]  ;;  %v2906_v24 = vor.u32 %v2615_v17, %v2127_v16 }
  0x31   :  { %1234 = vmatpush.bf16.msra.mxu3 %v2544_v42  ;;  %968 = vmatmul.bf16.vlgmr.msra.gmra.mxu0 %v2882_v47  ;;  %v2616_v21 = vld [vmem:[#allocation3 + $0x54] sm:$0xf0]  ;;  %v2614_v22 = vld [vmem:[#allocation3 + $0x4c] sm:$0xf]  ;;  %v2137_v23 = vld [vmem:[#allocation3 + $0x58] sm:$0xf0]  ;;  %v2908_v25 = vor.u32 %v2613_v18, %v2129_v19 }
  0x32   :  { %1057 = vmatmul.bf16.vlgmr.msra.gmra.mxu1 %v2884_v51  ;;  %1316 = vmatpush.bf16.msrb.mxu0 %v2412_v54  ;;  %v2910_v26 = vor.u32 %v2616_v21, %v2135_v20  ;;  %v2912_v27 = vor.u32 %v2614_v22, %v2137_v23  ;;  %v2711_v28 = vld [vmem:[#allocation6 + $0x154] sm:$0xf]  ;;  %v2521_v29 = vld [vmem:[#allocation6 + $0x158] sm:$0xf0]  ;;  %v2143_v40 = vld [vmem:[#allocation3 + $0x60] sm:$0xf] }
  0x33   :  { %1146 = vmatmul.bf16.vlgmr.msra.gmra.mxu2 %v2886_v52  ;;  %1405 = vmatpush.bf16.msrb.mxu1 %v2476_v55  ;;  %v2727_v30 = vld [vmem:[#allocation6 + $0x1d4] sm:$0xf]  ;;  %v2524_v31 = vor.u32 %v2711_v28, %v2521_v29  ;;  %v2585_v32 = vld [vmem:[#allocation6 + $0x1d8] sm:$0xf0]  ;;  %v2619_v41 = vld [vmem:[#allocation3 + $0x6c] sm:$0xf0] }
  0x34   :  { %1494 = vmatpush.bf16.msrb.mxu2 %v2540_v44  ;;  %1235 = vmatmul.bf16.vlgmr.msra.gmra.mxu3 %v2888_v53  ;;  %v2679_v33 = vld [vmem:[#allocation6 + $0x54] sm:$0xf]  ;;  %v2393_v34 = vld [vmem:[#allocation6 + $0x58] sm:$0xf0]  ;;  %v2588_v35 = vor.u32 %v2727_v30, %v2585_v32  ;;  %v2617_v42 = vld [vmem:[#allocation3 + $0x64] sm:$0xf]  ;;  %v2918_v49 = vor.u32 %v2619_v41, %v2143_v40 }
  0x35   :  { %1583 = vmatpush.bf16.msrb.mxu3 %v2604_v48  ;;  %v2396_v36 = vor.u32 %v2679_v33, %v2393_v34  ;;  %v2695_v37 = vld [vmem:[#allocation6 + $0xd4] sm:$0xf]  ;;  %v2457_v38 = vld [vmem:[#allocation6 + $0xd8] sm:$0xf0]  ;;  %v2151_v44 = vld [vmem:[#allocation3 + $0x68] sm:$0xf] }
  0x36   :  { %1317 = vmatpush.bf16.msrb.mxu0 %v2404_v0  ;;  %v2460_v39 = vor.u32 %v2695_v37, %v2457_v38  ;;  %v2145_v43 = vld [vmem:[#allocation3 + $0x70] sm:$0xf0]  ;;  %v2620_v45 = vld [vmem:[#allocation3 + $0x74] sm:$0xf0]  ;;  %v2618_v46 = vld [vmem:[#allocation3 + $0x6c] sm:$0xf] }
  0x37   :  { %1406 = vmatpush.bf16.msrb.mxu1 %v2468_v3  ;;  %v2153_v48 = vld [vmem:[#allocation3 + $0x78] sm:$0xf0]  ;;  %v2920_v50 = vor.u32 %v2617_v42, %v2145_v43  ;;  %v2922_v54 = vor.u32 %v2620_v45, %v2151_v44  ;;  %v2159_v56 = vld [vmem:[#allocation3 + $0x80] sm:$0xf]  ;;  %v2623_v57 = vld [vmem:[#allocation3 + $0x8c] sm:$0xf0] }
  0x38   :  { %1495 = vmatpush.bf16.msrb.mxu2 %v2532_v59  ;;  %v2924_v55 = vor.u32 %v2618_v46, %v2153_v48  ;;  %v2621_v58 = vld [vmem:[#allocation3 + $0x84] sm:$0xf]  ;;  %v2161_v59 = vld [vmem:[#allocation3 + $0x90] sm:$0xf0]  ;;  %v2167_v60 = vld [vmem:[#allocation3 + $0x88] sm:$0xf]  ;;  %v2930_v0 = vor.u32 %v2623_v57, %v2159_v56 }
  0x39   :  { %1584 = vmatpush.bf16.msrb.mxu3 %v2596_v63  ;;  %v2624_v61 = vld [vmem:[#allocation3 + $0x94] sm:$0xf0]  ;;  %v2622_v62 = vld [vmem:[#allocation3 + $0x8c] sm:$0xf]  ;;  %v2169_v63 = vld [vmem:[#allocation3 + $0x98] sm:$0xf0]  ;;  %v2932_v1 = vor.u32 %v2621_v58, %v2161_v59 }
  0x3a   :  { %1318 = vmatpush.bf16.msrb.mxu0 %v2396_v36  ;;  %v2934_v2 = vor.u32 %v2624_v61, %v2167_v60  ;;  %v2936_v3 = vor.u32 %v2622_v62, %v2169_v63  ;;  %v2709_v4 = vld [vmem:[#allocation6 + $0x144] sm:$0xf]  ;;  %v2513_v5 = vld [vmem:[#allocation6 + $0x148] sm:$0xf0]  ;;  %v2175_v20 = vld [vmem:[#allocation3 + $0xa0] sm:$0xf] }
  0x3b   :  { %1407 = vmatpush.bf16.msrb.mxu1 %v2460_v39  ;;  %v2725_v6 = vld [vmem:[#allocation6 + $0x1c4] sm:$0xf]  ;;  %v2516_v7 = vor.u32 %v2709_v4, %v2513_v5  ;;  %v2577_v8 = vld [vmem:[#allocation6 + $0x1c8] sm:$0xf0]  ;;  %v2627_v21 = vld [vmem:[#allocation3 + $0xac] sm:$0xf0] }
  0x3c   :  { %1496 = vmatpush.bf16.msrb.mxu2 %v2524_v31  ;;  %v2677_v9 = vld [vmem:[#allocation6 + $0x44] sm:$0xf]  ;;  %v2385_v10 = vld [vmem:[#allocation6 + $0x48] sm:$0xf0]  ;;  %v2580_v11 = vor.u32 %v2725_v6, %v2577_v8  ;;  %v2177_v23 = vld [vmem:[#allocation3 + $0xb0] sm:$0xf0]  ;;  %v2942_v32 = vor.u32 %v2627_v21, %v2175_v20 }
  0x3d   :  { %1585 = vmatpush.bf16.msrb.mxu3 %v2588_v35  ;;  %v2388_v16 = vor.u32 %v2677_v9, %v2385_v10  ;;  %v2693_v17 = vld [vmem:[#allocation6 + $0xc4] sm:$0xf]  ;;  %v2449_v18 = vld [vmem:[#allocation6 + $0xc8] sm:$0xf0]  ;;  %v2183_v28 = vld [vmem:[#allocation3 + $0xa8] sm:$0xf] }
  0x3e   :  { %v2452_v19 = vor.u32 %v2693_v17, %v2449_v18  ;;  %v2625_v22 = vld [vmem:[#allocation3 + $0xa4] sm:$0xf]  ;;  %v2628_v29 = vld [vmem:[#allocation3 + $0xb4] sm:$0xf0]  ;;  %v2626_v30 = vld [vmem:[#allocation3 + $0xac] sm:$0xf] }
  0x3f   :  { %1319 = vmatpush.bf16.msrb.mxu0 %v2388_v16  ;;  %v2185_v31 = vld [vmem:[#allocation3 + $0xb8] sm:$0xf0]  ;;  %v2944_v33 = vor.u32 %v2625_v22, %v2177_v23  ;;  %v2946_v34 = vor.u32 %v2628_v29, %v2183_v28  ;;  %v2191_v36 = vld [vmem:[#allocation3 + $0xc0] sm:$0xf]  ;;  %v2631_v37 = vld [vmem:[#allocation3 + $0xcc] sm:$0xf0] }
  0x40   :  { %1497 = vmatpush.bf16.msrb.mxu2 %v2516_v7  ;;  %1408 = vmatpush.bf16.msrb.mxu1 %v2452_v19  ;;  %v2948_v35 = vor.u32 %v2626_v30, %v2185_v31  ;;  %v2629_v38 = vld [vmem:[#allocation3 + $0xc4] sm:$0xf]  ;;  %v2193_v39 = vld [vmem:[#allocation3 + $0xd0] sm:$0xf0]  ;;  %v2199_v40 = vld [vmem:[#allocation3 + $0xc8] sm:$0xf]  ;;  %v2954_v44 = vor.u32 %v2631_v37, %v2191_v36 }
  0x41   :  { %973 = vmatmul.bf16.gmra.mxu0 %v2894_v12  ;;  %1586 = vmatpush.bf16.msrb.mxu3 %v2580_v11  ;;  %v2632_v41 = vld [vmem:[#allocation3 + $0xd4] sm:$0xf0]  ;;  %v2630_v42 = vld [vmem:[#allocation3 + $0xcc] sm:$0xf]  ;;  %v2201_v43 = vld [vmem:[#allocation3 + $0xd8] sm:$0xf0]  ;;  %v2956_v45 = vor.u32 %v2629_v38, %v2193_v39 }
  0x42   :  { %1062 = vmatmul.bf16.gmra.mxu1 %v2896_v13  ;;  %v2958_v46 = vor.u32 %v2632_v41, %v2199_v40  ;;  %v2960_v48 = vor.u32 %v2630_v42, %v2201_v43  ;;  %v2707_v56 = vld [vmem:[#allocation6 + $0x134] sm:$0xf]  ;;  %v2505_v57 = vld [vmem:[#allocation6 + $0x138] sm:$0xf0]  ;;  %v2207_v62 = vld [vmem:[#allocation3 + $0xe0] sm:$0xf] }
  0x43   :  { %1151 = vmatmul.bf16.gmra.mxu2 %v2898_v14  ;;  %v2723_v58 = vld [vmem:[#allocation6 + $0x1b4] sm:$0xf]  ;;  %v2508_v59 = vor.u32 %v2707_v56, %v2505_v57  ;;  %v2569_v60 = vld [vmem:[#allocation6 + $0x1b8] sm:$0xf0]  ;;  %v2635_v63 = vld [vmem:[#allocation3 + $0xec] sm:$0xf0] }
  0x44   :  { %1240 = vmatmul.bf16.gmra.mxu3 %v2900_v15  ;;  %v2572_v61 = vor.u32 %v2723_v58, %v2569_v60  ;;  %v2633_v4 = vld [vmem:[#allocation3 + $0xe4] sm:$0xf]  ;;  %v2209_v5 = vld [vmem:[#allocation3 + $0xf0] sm:$0xf0]  ;;  %v2215_v6 = vld [vmem:[#allocation3 + $0xe8] sm:$0xf]  ;;  %v2966_v17 = vor.u32 %v2635_v63, %v2207_v62 }
  0x45   :  { %1498 = vmatpush.bf16.msrb.mxu2 %v2508_v59  ;;  %v2636_v7 = vld [vmem:[#allocation3 + $0xf4] sm:$0xf0]  ;;  %v2634_v8 = vld [vmem:[#allocation3 + $0xec] sm:$0xf]  ;;  %v2217_v9 = vld [vmem:[#allocation3 + $0xf8] sm:$0xf0]  ;;  %v2968_v20 = vor.u32 %v2633_v4, %v2209_v5 }
  0x46   :  { %1587 = vmatpush.bf16.msrb.mxu3 %v2572_v61  ;;  %v2675_v10 = vld [vmem:[#allocation6 + $0x34] sm:$0xf]  ;;  %v2377_v11 = vld [vmem:[#allocation6 + $0x38] sm:$0xf0]  ;;  %v2970_v21 = vor.u32 %v2636_v7, %v2215_v6  ;;  %v2972_v23 = vor.u32 %v2634_v8, %v2217_v9  ;;  %v2223_v28 = vld [vmem:[#allocation3 + $0x100] sm:$0xf] }
  0x47   :  { %v2691_v16 = vld [vmem:[#allocation6 + $0xb4] sm:$0xf]  ;;  %v2380_v18 = vor.u32 %v2675_v10, %v2377_v11  ;;  %v2441_v19 = vld [vmem:[#allocation6 + $0xb8] sm:$0xf0]  ;;  %v2639_v29 = vld [vmem:[#allocation3 + $0x10c] sm:$0xf0] }
  0x48   :  { %v2444_v22 = vor.u32 %v2691_v16, %v2441_v19  ;;  %v2637_v30 = vld [vmem:[#allocation3 + $0x104] sm:$0xf]  ;;  %v2225_v31 = vld [vmem:[#allocation3 + $0x110] sm:$0xf0]  ;;  %v2231_v36 = vld [vmem:[#allocation3 + $0x108] sm:$0xf]  ;;  %v2978_v40 = vor.u32 %v2639_v29, %v2223_v28 }
  0x49   :  { %1320 = vmatpush.bf16.msrb.mxu0 %v2380_v18  ;;  %v2640_v37 = vld [vmem:[#allocation3 + $0x114] sm:$0xf0]  ;;  %v2638_v38 = vld [vmem:[#allocation3 + $0x10c] sm:$0xf]  ;;  %v2233_v39 = vld [vmem:[#allocation3 + $0x118] sm:$0xf0]  ;;  %v2980_v42 = vor.u32 %v2637_v30, %v2225_v31 }
  0x4a   :  { %1409 = vmatpush.bf16.msrb.mxu1 %v2444_v22  ;;  %v2982_v43 = vor.u32 %v2640_v37, %v2231_v36  ;;  %v2984_v57 = vor.u32 %v2638_v38, %v2233_v39  ;;  %v2705_v59 = vld [vmem:[#allocation6 + $0x124] sm:$0xf]  ;;  %v2497_v60 = vld [vmem:[#allocation6 + $0x128] sm:$0xf0]  ;;  %v2239_v16 = vld [vmem:[#allocation3 + $0x120] sm:$0xf] }
  0x4b   :  { %v2721_v61 = vld [vmem:[#allocation6 + $0x1a4] sm:$0xf]  ;;  %v2500_v63 = vor.u32 %v2705_v59, %v2497_v60  ;;  %v2561_v4 = vld [vmem:[#allocation6 + $0x1a8] sm:$0xf0]  ;;  %v2643_v18 = vld [vmem:[#allocation3 + $0x12c] sm:$0xf0] }
  0x4c   :  { %v2564_v8 = vor.u32 %v2721_v61, %v2561_v4  ;;  %v2641_v19 = vld [vmem:[#allocation3 + $0x124] sm:$0xf]  ;;  %v2241_v22 = vld [vmem:[#allocation3 + $0x130] sm:$0xf0]  ;;  %v2247_v28 = vld [vmem:[#allocation3 + $0x128] sm:$0xf] }
  0x4d   :  { %1499 = vmatpush.bf16.msrb.mxu2 %v2500_v63  ;;  %v2644_v29 = vld [vmem:[#allocation3 + $0x134] sm:$0xf0]  ;;  %v2642_v30 = vld [vmem:[#allocation3 + $0x12c] sm:$0xf]  ;;  %v2249_v31 = vld [vmem:[#allocation3 + $0x138] sm:$0xf0] }
  0x4e   :  { %1588 = vmatpush.bf16.msrb.mxu3 %v2564_v8  ;;  %v2673_v36 = vld [vmem:[#allocation6 + $0x24] sm:$0xf]  ;;  %v2369_v37 = vld [vmem:[#allocation6 + $0x28] sm:$0xf0]  ;;  %v2996_v63 = vor.u32 %v2644_v29, %v2247_v28  ;;  %v2255_v29 = vld [vmem:[#allocation3 + $0x140] sm:$0xf] }
  0x4f   :  { %v2689_v38 = vld [vmem:[#allocation6 + $0xa4] sm:$0xf]  ;;  %s2852_s0 = smov [#allocation9]   ;;  %s2082_s5 = sshll.u32 %s3308_s3, 4  ;;  %s2083_s5 = int_to_ptr.hbm [resolvable:$true] %s2082_s5 }
  0x50   :  { %3332 = vst [vmem:[#allocation15_spill] sm:$0xff] %v2996_v63  ;;  %s2080_s2 = sshll.u32 %s2852_s0, 4  ;;  %s2081_s2 = int_to_ptr.vmem [resolvable:$true] %s2080_s2 }
  0x51   :  { %978 = vmatmul.bf16.gmra.mxu0 %v2906_v24 }
  0x52   :  { %1067 = vmatmul.bf16.gmra.mxu1 %v2908_v25 }
  0x53   :  { %1156 = vmatmul.bf16.gmra.mxu2 %v2910_v26 }
  0x54   :  { %1245 = vmatmul.bf16.gmra.mxu3 %v2912_v27 }
  0x61   :  { %983 = vmatmul.bf16.gmra.mxu0 %v2918_v49 }
  0x62   :  { %1072 = vmatmul.bf16.gmra.mxu1 %v2920_v50 }
  0x63   :  { %1161 = vmatmul.bf16.gmra.mxu2 %v2922_v54 }
  0x64   :  { %1250 = vmatmul.bf16.gmra.mxu3 %v2924_v55 }
  0x71   :  { %988 = vmatmul.bf16.gmra.mxu0 %v2930_v0 }
  0x72   :  { %1077 = vmatmul.bf16.gmra.mxu1 %v2932_v1 }
  0x73   :  { %1166 = vmatmul.bf16.gmra.mxu2 %v2934_v2 }
  0x74   :  { %1255 = vmatmul.bf16.gmra.mxu3 %v2936_v3 }
  0x81   :  { %993 = vmatmul.bf16.gmra.mxu0 %v2942_v32 }
  0x82   :  { %1082 = vmatmul.bf16.gmra.mxu1 %v2944_v33 }
  0x83   :  { %1171 = vmatmul.bf16.gmra.mxu2 %v2946_v34 }
  0x84   :  { %1260 = vmatmul.bf16.gmra.mxu3 %v2948_v35 }
  0x91   :  { %998 = vmatmul.bf16.gmra.mxu0 %v2954_v44 }
  0x92   :  { %1087 = vmatmul.bf16.gmra.mxu1 %v2956_v45 }
  0x93   :  { %1176 = vmatmul.bf16.gmra.mxu2 %v2958_v46 }
  0x94   :  { %1265 = vmatmul.bf16.gmra.mxu3 %v2960_v48 }
  0xa1   :  { %1003 = vmatmul.bf16.gmra.mxu0 %v2966_v17 }
  0xa2   :  { %1092 = vmatmul.bf16.gmra.mxu1 %v2968_v20 }
  0xa3   :  { %1181 = vmatmul.bf16.gmra.mxu2 %v2970_v21 }
  0xa4   :  { %1270 = vmatmul.bf16.gmra.mxu3 %v2972_v23 }
  0xae   :  { %v969_v41 = vpop.f32.mrf.mxu0 }
  0xaf   :  { %v1058_v56 = vpop.f32.mrf.mxu1 }
  0xb0   :  { %v1059_v58 = vadd.f32 %v1058_v56, %v969_v41  ;;  %v2992_v41 = vor.u32 %v2643_v18, %v2239_v16  ;;  %v2372_v56 = vor.u32 %v2673_v36, %v2369_v37  ;;  %v2257_v36 = vld [vmem:[#allocation3 + $0x150] sm:$0xf0]  ;;  %v2263_v37 = vld [vmem:[#allocation3 + $0x148] sm:$0xf] }
  0xb1   :  { %1008 = vmatmul.bf16.gmra.mxu0 %v2978_v40 }
  0xb2   :  { %1097 = vmatmul.bf16.gmra.mxu1 %v2980_v42  ;;  %3330 = vst [vmem:[#allocation13_spill] sm:$0xff] %v2992_v41  ;;  %1321 = vmatpush.bf16.msrb.mxu0 %v2372_v56  ;;  %v2265_v56 = vld [vmem:[#allocation3 + $0x158] sm:$0xf0] }
  0xb3   :  { %1186 = vmatmul.bf16.gmra.mxu2 %v2982_v43 }
  0xb4   :  { %1275 = vmatmul.bf16.gmra.mxu3 %v2984_v57 }
  0xb6   :  { %v1147_v62 = vpop.f32.mrf.mxu2  ;;  %v971_v7 = vpop.f32.mrf.mxu0 }
  0xb7   :  { %v1148_v5 = vadd.f32 %v1147_v62, %v1059_v58  ;;  %v1236_v6 = vpop.f32.mrf.mxu3  ;;  %v1060_v9 = vpop.f32.mrf.mxu1  ;;  %v2433_v58 = vld [vmem:[#allocation6 + $0xa8] sm:$0xf0]  ;;  %v2994_v62 = vor.u32 %v2641_v19, %v2241_v22 }
  0xb8   :  { %v1061_v11 = vadd.f32 %v1060_v9, %v971_v7  ;;  %v2436_v4 = vor.u32 %v2689_v38, %v2433_v58  ;;  %v2648_v38 = vld [vmem:[#allocation3 + $0x154] sm:$0xf0] }
  0xb9   :  { %v2990_v10 = vadd.f32 %v1236_v6, %v1148_v5  ;;  %3331 = vst [vmem:[#allocation14_spill] sm:$0xff] %v2994_v62  ;;  %v2998_v6 = vor.u32 %v2642_v30, %v2249_v31  ;;  %v2647_v30 = vld [vmem:[#allocation3 + $0x14c] sm:$0xf0]  ;;  %v2645_v31 = vld [vmem:[#allocation3 + $0x144] sm:$0xf] }
  0xba   :  { %1410 = vmatpush.bf16.msrb.mxu1 %v2436_v4 }
  0xbb   :  { %3333 = vst [vmem:[#allocation16_spill] sm:$0xff] %v2998_v6 }
  0xbe   :  { %v1149_v39 = vpop.f32.mrf.mxu2  ;;  %v974_v61 = vpop.f32.mrf.mxu0 }
  0xbf   :  { %v1150_v59 = vadd.f32 %v1149_v39, %v1061_v11  ;;  %v1238_v60 = vpop.f32.mrf.mxu3  ;;  %v1063_v5 = vpop.f32.mrf.mxu1  ;;  %v2646_v39 = vld [vmem:[#allocation3 + $0x14c] sm:$0xf] }
  0xc0   :  { %v1064_v8 = vadd.f32 %v1063_v5, %v974_v61  ;;  %v3010_v5 = vor.u32 %v2645_v31, %v2257_v36  ;;  %v2553_v36 = vld [vmem:[#allocation6 + $0x198] sm:$0xf0] }
  0xc1   :  { %v3000_v7 = vadd.f32 %v1238_v60, %v1150_v59  ;;  %1013 = vmatmul.bf16.gmra.mxu0 %v2992_v41  ;;  %v3008_v59 = vor.u32 %v2647_v30, %v2255_v29  ;;  %v2719_v29 = vld [vmem:[#allocation6 + $0x194] sm:$0xf] }
  0xc2   :  { %1102 = vmatmul.bf16.gmra.mxu1 %v2994_v62  ;;  %3336 = vst [vmem:[#allocation19_spill] sm:$0xff] %v3010_v5 }
  0xc3   :  { %1191 = vmatmul.bf16.gmra.mxu2 %v2996_v63  ;;  %3335 = vst [vmem:[#allocation18_spill] sm:$0xff] %v3008_v59 }
  0xc4   :  { %1280 = vmatmul.bf16.gmra.mxu3 %v2998_v6  ;;  %v2281_v6 = vld [vmem:[#allocation3 + $0x178] sm:$0xf0] }
  0xc6   :  { %v1152_v9 = vpop.f32.mrf.mxu2  ;;  %v976_v18 = vpop.f32.mrf.mxu0 }
  0xc7   :  { %v1153_v11 = vadd.f32 %v1152_v9, %v1064_v8  ;;  %v1241_v16 = vpop.f32.mrf.mxu3  ;;  %v1065_v19 = vpop.f32.mrf.mxu1  ;;  %v3012_v8 = vor.u32 %v2648_v38, %v2263_v37 }
  0xc8   :  { %v1066_v28 = vadd.f32 %v1065_v19, %v976_v18  ;;  %v2703_v19 = vld [vmem:[#allocation6 + $0x114] sm:$0xf] }
  0xc9   :  { %v3006_v22 = vadd.f32 %v1241_v16, %v1153_v11  ;;  %3337 = vst [vmem:[#allocation20_spill] sm:$0xff] %v3012_v8  ;;  %v3014_v11 = vor.u32 %v2646_v39, %v2265_v56  ;;  %v2556_v56 = vor.u32 %v2719_v29, %v2553_v36 }
  0xcb   :  { %3334 = vst [vmem:[#allocation17_spill] sm:$0xff] %v3006_v22  ;;  %1589 = vmatpush.bf16.msrb.mxu3 %v2556_v56 }
  0xcc   :  { %3338 = vst [vmem:[#allocation21_spill] sm:$0xff] %v3014_v11 }
  0xce   :  { %v1154_v58 = vpop.f32.mrf.mxu2  ;;  %v979_v4 = vpop.f32.mrf.mxu0 }
  0xcf   :  { %v1155_v60 = vadd.f32 %v1154_v58, %v1066_v28  ;;  %v1243_v61 = vpop.f32.mrf.mxu3  ;;  %v1068_v9 = vpop.f32.mrf.mxu1  ;;  %v2489_v28 = vld [vmem:[#allocation6 + $0x118] sm:$0xf0] }
  0xd0   :  { %v1069_v18 = vadd.f32 %v1068_v9, %v979_v4  ;;  %v2492_v31 = vor.u32 %v2703_v19, %v2489_v28  ;;  %v2271_v4 = vld [vmem:[#allocation3 + $0x160] sm:$0xf]  ;;  %v2651_v9 = vld [vmem:[#allocation3 + $0x16c] sm:$0xf0]  ;;  %v2671_v19 = vld [vmem:[#allocation6 + $0x14] sm:$0xf] }
  0xd1   :  { %v3016_v16 = vadd.f32 %v1243_v61, %v1155_v60  ;;  %1018 = vmatmul.bf16.gmra.mxu0 %v3008_v59  ;;  %v2652_v59 = vld [vmem:[#allocation3 + $0x174] sm:$0xf0]  ;;  %v2361_v28 = vld [vmem:[#allocation6 + $0x18] sm:$0xf0]  ;;  %v3024_v63 = vor.u32 %v2651_v9, %v2271_v4  ;;  %v2287_v4 = vld [vmem:[#allocation3 + $0x180] sm:$0xf] }
  0xd2   :  { %1107 = vmatmul.bf16.gmra.mxu1 %v3010_v5  ;;  %1500 = vmatpush.bf16.msrb.mxu2 %v2492_v31  ;;  %v2279_v5 = vld [vmem:[#allocation3 + $0x168] sm:$0xf]  ;;  %v2364_v29 = vor.u32 %v2671_v19, %v2361_v28  ;;  %v2425_v31 = vld [vmem:[#allocation6 + $0x98] sm:$0xf0]  ;;  %v2655_v9 = vld [vmem:[#allocation3 + $0x18c] sm:$0xf0] }
  0xd3   :  { %3339 = vst [vmem:[#allocation22_spill] sm:$0xff] %v3016_v16  ;;  %1196 = vmatmul.bf16.gmra.mxu2 %v3012_v8  ;;  %v2649_v8 = vld [vmem:[#allocation3 + $0x164] sm:$0xf]  ;;  %v2650_v16 = vld [vmem:[#allocation3 + $0x16c] sm:$0xf]  ;;  %v3028_v56 = vor.u32 %v2652_v59, %v2279_v5 }
  0xd4   :  { %1285 = vmatmul.bf16.gmra.mxu3 %v3014_v11  ;;  %v2273_v11 = vld [vmem:[#allocation3 + $0x170] sm:$0xf0]  ;;  %3341 = vst [vmem:[#allocation24_spill] sm:$0xff] %v3024_v63  ;;  %v3030_v62 = vor.u32 %v2650_v16, %v2281_v6  ;;  %1322 = vmatpush.bf16.msrb.mxu0 %v2364_v29  ;;  %v2295_v28 = vld [vmem:[#allocation3 + $0x188] sm:$0xf] }
  0xd5   :  { %3343 = vst [vmem:[#allocation26_spill] sm:$0xff] %v3028_v56  ;;  %v2289_v19 = vld [vmem:[#allocation3 + $0x190] sm:$0xf0]  ;;  %v2297_v29 = vld [vmem:[#allocation3 + $0x198] sm:$0xf0] }
  0xd6   :  { %v1157_v30 = vpop.f32.mrf.mxu2  ;;  %v981_v39 = vpop.f32.mrf.mxu0  ;;  %3344 = vst [vmem:[#allocation27_spill] sm:$0xff] %v3030_v62 }
  0xd7   :  { %v1158_v37 = vadd.f32 %v1157_v30, %v1069_v18  ;;  %v1246_v38 = vpop.f32.mrf.mxu3  ;;  %v1070_v58 = vpop.f32.mrf.mxu1  ;;  %v2687_v18 = vld [vmem:[#allocation6 + $0x94] sm:$0xf] }
  0xd8   :  { %v1071_v61 = vadd.f32 %v1070_v58, %v981_v39  ;;  %v3026_v39 = vor.u32 %v2649_v8, %v2273_v11  ;;  %v2428_v58 = vor.u32 %v2687_v18, %v2425_v31  ;;  %v2656_v18 = vld [vmem:[#allocation3 + $0x194] sm:$0xf0] }
  0xd9   :  { %v3022_v60 = vadd.f32 %v1246_v38, %v1158_v37 }
  0xda   :  { %3342 = vst [vmem:[#allocation25_spill] sm:$0xff] %v3026_v39  ;;  %1411 = vmatpush.bf16.msrb.mxu1 %v2428_v58 }
  0xdb   :  { %3340 = vst [vmem:[#allocation23_spill] sm:$0xff] %v3022_v60 }
  0xde   :  { %v1159_v30 = vpop.f32.mrf.mxu2  ;;  %v984_v38 = vpop.f32.mrf.mxu0 }
  0xdf   :  { %v1160_v36 = vadd.f32 %v1159_v30, %v1071_v61  ;;  %v1248_v37 = vpop.f32.mrf.mxu3  ;;  %v1073_v60 = vpop.f32.mrf.mxu1  ;;  %v2654_v30 = vld [vmem:[#allocation3 + $0x18c] sm:$0xf] }
  0xe0   :  { %v1074_v41 = vadd.f32 %v1073_v60, %v984_v38  ;;  %v2653_v60 = vld [vmem:[#allocation3 + $0x184] sm:$0xf] }
  0xe1   :  { %v3032_v22 = vadd.f32 %v1248_v37, %v1160_v36  ;;  %1023 = vmatmul.bf16.gmra.mxu0 %v3024_v63  ;;  %v3040_v36 = vor.u32 %v2655_v9, %v2287_v4  ;;  %v3042_v58 = vor.u32 %v2653_v60, %v2289_v19  ;;  %v2481_v4 = vld [vmem:[#allocation6 + $0x108] sm:$0xf0]  ;;  %v2717_v9 = vld [vmem:[#allocation6 + $0x184] sm:$0xf] }
  0xe2   :  { %1112 = vmatmul.bf16.gmra.mxu1 %v3026_v39 }
  0xe3   :  { %3345 = vst [vmem:[#allocation28_spill] sm:$0xff] %v3032_v22  ;;  %1201 = vmatmul.bf16.gmra.mxu2 %v3028_v56  ;;  %v2313_v56 = vld [vmem:[#allocation3 + $0x1b8] sm:$0xf0] }
  0xe4   :  { %1290 = vmatmul.bf16.gmra.mxu3 %v3030_v62  ;;  %3347 = vst [vmem:[#allocation30_spill] sm:$0xff] %v3040_v36  ;;  %v2658_v62 = vld [vmem:[#allocation3 + $0x1ac] sm:$0xf] }
  0xe5   :  { %3348 = vst [vmem:[#allocation31_spill] sm:$0xff] %v3042_v58 }
  0xe6   :  { %v1162_v8 = vpop.f32.mrf.mxu2  ;;  %v986_v11 = vpop.f32.mrf.mxu0 }
  0xe7   :  { %v1163_v59 = vadd.f32 %v1162_v8, %v1074_v41  ;;  %v1251_v5 = vpop.f32.mrf.mxu3  ;;  %v1075_v61 = vpop.f32.mrf.mxu1  ;;  %v3044_v8 = vor.u32 %v2656_v18, %v2295_v28  ;;  %v2545_v28 = vld [vmem:[#allocation6 + $0x188] sm:$0xf0] }
  0xe8   :  { %v1076_v16 = vadd.f32 %v1075_v61, %v986_v11 }
  0xe9   :  { %v3038_v6 = vadd.f32 %v1251_v5, %v1163_v59  ;;  %3349 = vst [vmem:[#allocation32_spill] sm:$0xff] %v3044_v8  ;;  %v3046_v5 = vor.u32 %v2654_v30, %v2297_v29 }
  0xeb   :  { %3346 = vst [vmem:[#allocation29_spill] sm:$0xff] %v3038_v6  ;;  %v3062_v6 = vor.u32 %v2658_v62, %v2313_v56 }
  0xec   :  { %3350 = vst [vmem:[#allocation33_spill] sm:$0xff] %v3046_v5 }
  0xed   :  { %3353 = vst [vmem:[#allocation36_spill] sm:$0xff] %v3062_v6 }
  0xee   :  { %v1164_v31 = vpop.f32.mrf.mxu2  ;;  %v989_v41 = vpop.f32.mrf.mxu0 }
  0xef   :  { %v1165_v37 = vadd.f32 %v1164_v31, %v1076_v16  ;;  %v1253_v38 = vpop.f32.mrf.mxu3  ;;  %v1078_v59 = vpop.f32.mrf.mxu1  ;;  %v2701_v16 = vld [vmem:[#allocation6 + $0x104] sm:$0xf]  ;;  %v2548_v31 = vor.u32 %v2717_v9, %v2545_v28 }
  0xf0   :  { %v1079_v61 = vadd.f32 %v1078_v59, %v989_v41  ;;  %v2484_v19 = vor.u32 %v2701_v16, %v2481_v4  ;;  %v2303_v59 = vld [vmem:[#allocation3 + $0x1a0] sm:$0xf]  ;;  %v2669_v16 = vld [vmem:[#allocation6 + $0x4] sm:$0xf]  ;;  %v2353_v4 = vld [vmem:[#allocation6 + $0x8] sm:$0xf0] }
  0xf1   :  { %v3048_v11 = vadd.f32 %v1253_v38, %v1165_v37  ;;  %1028 = vmatmul.bf16.gmra.mxu0 %v3040_v36  ;;  %1590 = vmatpush.bf16.msrb.mxu3 %v2548_v31  ;;  %v2311_v36 = vld [vmem:[#allocation3 + $0x1a8] sm:$0xf]  ;;  %v2356_v9 = vor.u32 %v2669_v16, %v2353_v4  ;;  %v2321_v16 = vld [vmem:[#allocation3 + $0x1d0] sm:$0xf0] }
  0xf2   :  { %1117 = vmatmul.bf16.gmra.mxu1 %v3042_v58  ;;  %1501 = vmatpush.bf16.msrb.mxu2 %v2484_v19  ;;  %v2657_v58 = vld [vmem:[#allocation3 + $0x1a4] sm:$0xf]  ;;  %v2417_v19 = vld [vmem:[#allocation6 + $0x88] sm:$0xf0]  ;;  %v2327_v4 = vld [vmem:[#allocation3 + $0x1c8] sm:$0xf] }
  0xf3   :  { %3351 = vst [vmem:[#allocation34_spill] sm:$0xff] %v3048_v11  ;;  %1206 = vmatmul.bf16.gmra.mxu2 %v3044_v8  ;;  %v2659_v8 = vld [vmem:[#allocation3 + $0x1ac] sm:$0xf0]  ;;  %v2660_v11 = vld [vmem:[#allocation3 + $0x1b4] sm:$0xf0]  ;;  %1323 = vmatpush.bf16.msrb.mxu0 %v2356_v9 }
  0xf4   :  { %1295 = vmatmul.bf16.gmra.mxu3 %v3046_v5  ;;  %v2305_v5 = vld [vmem:[#allocation3 + $0x1b0] sm:$0xf0]  ;;  %v3056_v39 = vor.u32 %v2659_v8, %v2303_v59  ;;  %v3060_v31 = vor.u32 %v2660_v11, %v2311_v36  ;;  %v2663_v59 = vld [vmem:[#allocation3 + $0x1cc] sm:$0xf0]  ;;  %v2329_v9 = vld [vmem:[#allocation3 + $0x1d8] sm:$0xf0] }
  0xf6   :  { %v1167_v60 = vpop.f32.mrf.mxu2  ;;  %v991_v29 = vpop.f32.mrf.mxu0 }
  0xf7   :  { %v1168_v18 = vadd.f32 %v1167_v60, %v1079_v61  ;;  %v1256_v30 = vpop.f32.mrf.mxu3  ;;  %v1080_v37 = vpop.f32.mrf.mxu1  ;;  %v2685_v61 = vld [vmem:[#allocation6 + $0x84] sm:$0xf] }
  0xf8   :  { %v1081_v41 = vadd.f32 %v1080_v37, %v991_v29  ;;  %v3058_v29 = vor.u32 %v2657_v58, %v2305_v5  ;;  %v2420_v37 = vor.u32 %v2685_v61, %v2417_v19  ;;  %v2664_v61 = vld [vmem:[#allocation3 + $0x1d4] sm:$0xf0] }
  0xf9   :  { %v3054_v38 = vadd.f32 %v1256_v30, %v1168_v18 }
  0xfa   :  { %1412 = vmatpush.bf16.msrb.mxu1 %v2420_v37 }
  0xfb   :  { %3352 = vst [vmem:[#allocation35_spill] sm:$0xff] %v3054_v38 }
  0xfe   :  { %v1169_v60 = vpop.f32.mrf.mxu2  ;;  %v994_v30 = vpop.f32.mrf.mxu0 }
  0xff   :  { %v1170_v28 = vadd.f32 %v1169_v60, %v1081_v41  ;;  %v1258_v18 = vpop.f32.mrf.mxu3  ;;  %v1083_v38 = vpop.f32.mrf.mxu1  ;;  %v2319_v41 = vld [vmem:[#allocation3 + $0x1c0] sm:$0xf]  ;;  %v2662_v60 = vld [vmem:[#allocation3 + $0x1cc] sm:$0xf] }
 0x100   :  { %v1084_v22 = vadd.f32 %v1083_v38, %v994_v30  ;;  %v2661_v38 = vld [vmem:[#allocation3 + $0x1c4] sm:$0xf] }
 0x101   :  { %v3064_v63 = vadd.f32 %v1258_v18, %v1170_v28  ;;  %1033 = vmatmul.bf16.gmra.mxu0 %v3056_v39  ;;  %v3072_v28 = vor.u32 %v2663_v59, %v2319_v41  ;;  %v3074_v37 = vor.u32 %v2661_v38, %v2321_v16 }
 0x102   :  { %1122 = vmatmul.bf16.gmra.mxu1 %v3058_v29 }
 0x103   :  { %1211 = vmatmul.bf16.gmra.mxu2 %v3060_v31  ;;  %3354 = vst [vmem:[#allocation37_spill] sm:$0xff] %v3072_v28 }
 0x104   :  { %1300 = vmatmul.bf16.gmra.mxu3 %v3062_v6  ;;  %3355 = vst [vmem:[#allocation38_spill] sm:$0xff] %v3074_v37 }
 0x106   :  { %v1172_v58 = vpop.f32.mrf.mxu2  ;;  %v996_v5 = vpop.f32.mrf.mxu0 }
 0x107   :  { %v1173_v36 = vadd.f32 %v1172_v58, %v1084_v22  ;;  %v1261_v8 = vpop.f32.mrf.mxu3  ;;  %v1085_v11 = vpop.f32.mrf.mxu1  ;;  %v3076_v58 = vor.u32 %v2664_v61, %v2327_v4 }
 0x108   :  { %v1086_v56 = vadd.f32 %v1085_v11, %v996_v5 }
 0x109   :  { %v3070_v62 = vadd.f32 %v1261_v8, %v1173_v36  ;;  %3356 = vst [vmem:[#allocation39_spill] sm:$0xff] %v3076_v58  ;;  %v3078_v8 = vor.u32 %v2662_v60, %v2329_v9  ;;  %v2335_v60 = vld [vmem:[#allocation3 + $0x1e0] sm:$0xf]  ;;  %v2667_v9 = vld [vmem:[#allocation3 + $0x1ec] sm:$0xf0] }
 0x10b   :  { %3357 = vst [vmem:[#allocation40_spill] sm:$0xff] %v3078_v8 }
 0x10e   :  { %v1174_v19 = vpop.f32.mrf.mxu2  ;;  %v999_v22 = vpop.f32.mrf.mxu0 }
 0x10f   :  { %v1175_v18 = vadd.f32 %v1174_v19, %v1086_v56  ;;  %v1263_v30 = vpop.f32.mrf.mxu3  ;;  %v1088_v36 = vpop.f32.mrf.mxu1  ;;  %v2665_v19 = vld [vmem:[#allocation3 + $0x1e4] sm:$0xf] }
 0x110   :  { %v1089_v11 = vadd.f32 %v1088_v36, %v999_v22  ;;  %v2668_v22 = vld [vmem:[#allocation3 + $0x1f4] sm:$0xf0]  ;;  %v2666_v36 = vld [vmem:[#allocation3 + $0x1ec] sm:$0xf] }
 0x111   :  { %v3080_v5 = vadd.f32 %v1263_v30, %v1175_v18  ;;  %1038 = vmatmul.bf16.gmra.mxu0 %v3072_v28  ;;  %v2337_v18 = vld [vmem:[#allocation3 + $0x1f0] sm:$0xf0]  ;;  %v2343_v30 = vld [vmem:[#allocation3 + $0x1e8] sm:$0xf] }
 0x112   :  { %1127 = vmatmul.bf16.gmra.mxu1 %v3074_v37  ;;  %v2345_v37 = vld [vmem:[#allocation3 + $0x1f8] sm:$0xf0]  ;;  %v3092_v6 = vor.u32 %v2668_v22, %v2343_v30 }
 0x113   :  { %3358 = vst [vmem:[#allocation41_spill] sm:$0xff] %v3080_v5  ;;  %1216 = vmatmul.bf16.gmra.mxu2 %v3076_v58  ;;  %v3088_v58 = vor.u32 %v2667_v9, %v2335_v60 }
 0x114   :  { %1305 = vmatmul.bf16.gmra.mxu3 %v3078_v8 }
 0x116   :  { %v1177_v56 = vpop.f32.mrf.mxu2  ;;  %v1001_v38 = vpop.f32.mrf.mxu0 }
 0x117   :  { %v1178_v41 = vadd.f32 %v1177_v56, %v1089_v11  ;;  %v1266_v59 = vpop.f32.mrf.mxu3  ;;  %v1090_v16 = vpop.f32.mrf.mxu1  ;;  %v3090_v56 = vor.u32 %v2665_v19, %v2337_v18 }
 0x118   :  { %v1091_v61 = vadd.f32 %v1090_v16, %v1001_v38 }
 0x119   :  { %v3086_v4 = vadd.f32 %v1266_v59, %v1178_v41  ;;  %v3094_v59 = vor.u32 %v2666_v36, %v2345_v37 }
 0x11e   :  { %v1179_v28 = vpop.f32.mrf.mxu2  ;;  %v1004_v11 = vpop.f32.mrf.mxu0 }
 0x11f   :  { %v1180_v8 = vadd.f32 %v1179_v28, %v1091_v61  ;;  %v1268_v5 = vpop.f32.mrf.mxu3  ;;  %v1093_v41 = vpop.f32.mrf.mxu1 }
 0x120   :  { %v1094_v16 = vadd.f32 %v1093_v41, %v1004_v11 }
 0x121   :  { %v3096_v38 = vadd.f32 %v1268_v5, %v1180_v8  ;;  %1043 = vmatmul.bf16.gmra.mxu0 %v3088_v58 }
 0x122   :  { %1132 = vmatmul.bf16.gmra.mxu1 %v3090_v56 }
 0x123   :  { %1221 = vmatmul.bf16.gmra.mxu2 %v3092_v6 }
 0x124   :  { %1310 = vmatmul.bf16.gmra.mxu3 %v3094_v59 }
 0x126   :  { %v1182_v28 = vpop.f32.mrf.mxu2  ;;  %v1006_v9 = vpop.f32.mrf.mxu0 }
 0x127   :  { %v1183_v61 = vadd.f32 %v1182_v28, %v1094_v16  ;;  %v1271_v60 = vpop.f32.mrf.mxu3  ;;  %v1095_v19 = vpop.f32.mrf.mxu1 }
 0x128   :  { %v1096_v37 = vadd.f32 %v1095_v19, %v1006_v9 }
 0x129   :  { %v3102_v18 = vadd.f32 %v1271_v60, %v1183_v61 }
 0x12e   :  { %v1184_v30 = vpop.f32.mrf.mxu2  ;;  %v1009_v22 = vpop.f32.mrf.mxu0 }
 0x12f   :  { %v1185_v8 = vadd.f32 %v1184_v30, %v1096_v37  ;;  %v1273_v5 = vpop.f32.mrf.mxu3  ;;  %v1098_v36 = vpop.f32.mrf.mxu1 }
 0x130   :  { %v1099_v41 = vadd.f32 %v1098_v36, %v1009_v22 }
 0x131   :  { %v3104_v11 = vadd.f32 %v1273_v5, %v1185_v8  ;;  %1324 = vmatmul.bf16.vlgmr.msrb.gmra.mxu0 %v2882_v47 }
 0x132   :  { %1413 = vmatmul.bf16.vlgmr.msrb.gmra.mxu1 %v2884_v51 }
 0x133   :  { %1502 = vmatmul.bf16.vlgmr.msrb.gmra.mxu2 %v2886_v52 }
 0x134   :  { %1591 = vmatmul.bf16.vlgmr.msrb.gmra.mxu3 %v2888_v53 }
 0x136   :  { %v1187_v16 = vpop.f32.mrf.mxu2  ;;  %v1011_v60 = vpop.f32.mrf.mxu0 }
 0x137   :  { %v1188_v28 = vadd.f32 %v1187_v16, %v1099_v41  ;;  %v1276_v61 = vpop.f32.mrf.mxu3  ;;  %v1100_v9 = vpop.f32.mrf.mxu1 }
 0x138   :  { %v1101_v37 = vadd.f32 %v1100_v9, %v1011_v60 }
 0x139   :  { %v3110_v19 = vadd.f32 %v1276_v61, %v1188_v28 }
 0x13e   :  { %v1189_v30 = vpop.f32.mrf.mxu2  ;;  %v1014_v22 = vpop.f32.mrf.mxu0 }
 0x13f   :  { %v1190_v8 = vadd.f32 %v1189_v30, %v1101_v37  ;;  %v1278_v5 = vpop.f32.mrf.mxu3  ;;  %v1103_v36 = vpop.f32.mrf.mxu1 }
 0x140   :  { %v1104_v51 = vadd.f32 %v1103_v36, %v1014_v22 }
 0x141   :  { %v3112_v47 = vadd.f32 %v1278_v5, %v1190_v8  ;;  %1329 = vmatmul.bf16.gmra.mxu0 %v2894_v12 }
 0x142   :  { %1418 = vmatmul.bf16.gmra.mxu1 %v2896_v13 }
 0x143   :  { %1507 = vmatmul.bf16.gmra.mxu2 %v2898_v14 }
 0x144   :  { %1596 = vmatmul.bf16.gmra.mxu3 %v2900_v15 }
 0x146   :  { %v1192_v52 = vpop.f32.mrf.mxu2  ;;  %v1016_v16 = vpop.f32.mrf.mxu0 }
 0x147   :  { %v1193_v53 = vadd.f32 %v1192_v52, %v1104_v51  ;;  %v1281_v41 = vpop.f32.mrf.mxu3  ;;  %v1105_v28 = vpop.f32.mrf.mxu1 }
 0x148   :  { %v1106_v60 = vadd.f32 %v1105_v28, %v1016_v16 }
 0x149   :  { %v3118_v61 = vadd.f32 %v1281_v41, %v1193_v53 }
 0x14e   :  { %v1194_v9 = vpop.f32.mrf.mxu2  ;;  %v1019_v8 = vpop.f32.mrf.mxu0 }
 0x14f   :  { %v1195_v37 = vadd.f32 %v1194_v9, %v1106_v60  ;;  %v1283_v30 = vpop.f32.mrf.mxu3  ;;  %v1108_v5 = vpop.f32.mrf.mxu1 }
 0x150   :  { %v1109_v13 = vadd.f32 %v1108_v5, %v1019_v8 }
 0x151   :  { %v3120_v12 = vadd.f32 %v1283_v30, %v1195_v37  ;;  %1334 = vmatmul.bf16.gmra.mxu0 %v2906_v24 }
 0x152   :  { %1423 = vmatmul.bf16.gmra.mxu1 %v2908_v25 }
 0x153   :  { %1512 = vmatmul.bf16.gmra.mxu2 %v2910_v26 }
 0x154   :  { %1601 = vmatmul.bf16.gmra.mxu3 %v2912_v27 }
 0x156   :  { %v1197_v14 = vpop.f32.mrf.mxu2  ;;  %v1021_v36 = vpop.f32.mrf.mxu0 }
 0x157   :  { %v1198_v15 = vadd.f32 %v1197_v14, %v1109_v13  ;;  %v1286_v22 = vpop.f32.mrf.mxu3  ;;  %v1110_v51 = vpop.f32.mrf.mxu1 }
 0x158   :  { %v1111_v53 = vadd.f32 %v1110_v51, %v1021_v36 }
 0x159   :  { %v3126_v52 = vadd.f32 %v1286_v22, %v1198_v15 }
 0x15e   :  { %v1199_v41 = vpop.f32.mrf.mxu2  ;;  %v1024_v60 = vpop.f32.mrf.mxu0 }
 0x15f   :  { %v1200_v16 = vadd.f32 %v1199_v41, %v1111_v53  ;;  %v1288_v28 = vpop.f32.mrf.mxu3  ;;  %v1113_v9 = vpop.f32.mrf.mxu1 }
 0x160   :  { %v1114_v25 = vadd.f32 %v1113_v9, %v1024_v60 }
 0x161   :  { %v3128_v24 = vadd.f32 %v1288_v28, %v1200_v16  ;;  %1339 = vmatmul.bf16.gmra.mxu0 %v2918_v49 }
 0x162   :  { %1428 = vmatmul.bf16.gmra.mxu1 %v2920_v50 }
 0x163   :  { %1517 = vmatmul.bf16.gmra.mxu2 %v2922_v54 }
 0x164   :  { %1606 = vmatmul.bf16.gmra.mxu3 %v2924_v55 }
 0x166   :  { %v1202_v26 = vpop.f32.mrf.mxu2  ;;  %v1026_v30 = vpop.f32.mrf.mxu0 }
 0x167   :  { %v1203_v27 = vadd.f32 %v1202_v26, %v1114_v25  ;;  %v1291_v37 = vpop.f32.mrf.mxu3  ;;  %v1115_v8 = vpop.f32.mrf.mxu1 }
 0x168   :  { %v1116_v13 = vadd.f32 %v1115_v8, %v1026_v30 }
 0x169   :  { %v3134_v5 = vadd.f32 %v1291_v37, %v1203_v27 }
 0x16e   :  { %v1204_v14 = vpop.f32.mrf.mxu2  ;;  %v1029_v36 = vpop.f32.mrf.mxu0 }
 0x16f   :  { %v1205_v15 = vadd.f32 %v1204_v14, %v1116_v13  ;;  %v1293_v22 = vpop.f32.mrf.mxu3  ;;  %v1118_v51 = vpop.f32.mrf.mxu1 }
 0x170   :  { %v1119_v50 = vadd.f32 %v1118_v51, %v1029_v36 }
 0x171   :  { %v3136_v49 = vadd.f32 %v1293_v22, %v1205_v15  ;;  %1344 = vmatmul.bf16.gmra.mxu0 %v2930_v0 }
 0x172   :  { %1433 = vmatmul.bf16.gmra.mxu1 %v2932_v1 }
 0x173   :  { %1522 = vmatmul.bf16.gmra.mxu2 %v2934_v2 }
 0x174   :  { %1611 = vmatmul.bf16.gmra.mxu3 %v2936_v3 }
 0x176   :  { %v1207_v54 = vpop.f32.mrf.mxu2  ;;  %v1031_v41 = vpop.f32.mrf.mxu0 }
 0x177   :  { %v1208_v55 = vadd.f32 %v1207_v54, %v1119_v50  ;;  %v1296_v53 = vpop.f32.mrf.mxu3  ;;  %v1120_v16 = vpop.f32.mrf.mxu1 }
 0x178   :  { %v1121_v60 = vadd.f32 %v1120_v16, %v1031_v41 }
 0x179   :  { %v3142_v28 = vadd.f32 %v1296_v53, %v1208_v55 }
 0x17e   :  { %v1209_v9 = vpop.f32.mrf.mxu2  ;;  %v1034_v27 = vpop.f32.mrf.mxu0 }
 0x17f   :  { %v1210_v25 = vadd.f32 %v1209_v9, %v1121_v60  ;;  %v1298_v26 = vpop.f32.mrf.mxu3  ;;  %v1123_v37 = vpop.f32.mrf.mxu1 }
 0x180   :  { %v1124_v1 = vadd.f32 %v1123_v37, %v1034_v27 }
 0x181   :  { %v3144_v0 = vadd.f32 %v1298_v26, %v1210_v25  ;;  %1349 = vmatmul.bf16.gmra.mxu0 %v2942_v32 }
 0x182   :  { %1438 = vmatmul.bf16.gmra.mxu1 %v2944_v33 }
 0x183   :  { %1527 = vmatmul.bf16.gmra.mxu2 %v2946_v34 }
 0x184   :  { %1616 = vmatmul.bf16.gmra.mxu3 %v2948_v35 }
 0x186   :  { %v1212_v2 = vpop.f32.mrf.mxu2  ;;  %v1036_v8 = vpop.f32.mrf.mxu0 }
 0x187   :  { %v1213_v3 = vadd.f32 %v1212_v2, %v1124_v1  ;;  %v1301_v30 = vpop.f32.mrf.mxu3  ;;  %v1125_v13 = vpop.f32.mrf.mxu1 }
 0x188   :  { %v1126_v15 = vadd.f32 %v1125_v13, %v1036_v8 }
 0x189   :  { %v3150_v14 = vadd.f32 %v1301_v30, %v1213_v3 }
 0x18e   :  { %v1214_v22 = vpop.f32.mrf.mxu2  ;;  %v1039_v50 = vpop.f32.mrf.mxu0 }
 0x18f   :  { %v1215_v36 = vadd.f32 %v1214_v22, %v1126_v15  ;;  %v1303_v51 = vpop.f32.mrf.mxu3  ;;  %v1128_v54 = vpop.f32.mrf.mxu1 }
 0x190   :  { %v1129_v33 = vadd.f32 %v1128_v54, %v1039_v50  ;;  %v1867_v50 = vld [vmem:[#allocation8] sm:$0x3] }
 0x191   :  { %v3152_v32 = vadd.f32 %v1303_v51, %v1215_v36  ;;  %1354 = vmatmul.bf16.gmra.mxu0 %v2954_v44 }
 0x192   :  { %1443 = vmatmul.bf16.gmra.mxu1 %v2956_v45 }
 0x193   :  { %1532 = vmatmul.bf16.gmra.mxu2 %v2958_v46 }
 0x194   :  { %1621 = vmatmul.bf16.gmra.mxu3 %v2960_v48 }
 0x196   :  { %v1217_v34 = vpop.f32.mrf.mxu2  ;;  %v1041_v53 = vpop.f32.mrf.mxu0 }
 0x197   :  { %v1218_v35 = vadd.f32 %v1217_v34, %v1129_v33  ;;  %v1306_v55 = vpop.f32.mrf.mxu3  ;;  %v1130_v41 = vpop.f32.mrf.mxu1  ;;  %v3176_v34 = vperm.slane %v1867_v50, 1 }
 0x198   :  { %v1131_v60 = vadd.f32 %v1130_v41, %v1041_v53 }
 0x199   :  { %v3158_v16 = vadd.f32 %v1306_v55, %v1218_v35 }
 0x19e   :  { %v1219_v9 = vpop.f32.mrf.mxu2  ;;  %v1044_v27 = vpop.f32.mrf.mxu0 }
 0x19f   :  { %v1220_v25 = vadd.f32 %v1219_v9, %v1131_v60  ;;  %v1308_v26 = vpop.f32.mrf.mxu3  ;;  %v1133_v37 = vpop.f32.mrf.mxu1 }
 0x1a0   :  { %v1134_v45 = vadd.f32 %v1133_v37, %v1044_v27 }
 0x1a1   :  { %v3160_v44 = vadd.f32 %v1308_v26, %v1220_v25  ;;  %1359 = vmatmul.bf16.gmra.mxu0 %v2966_v17 }
 0x1a2   :  { %1448 = vmatmul.bf16.gmra.mxu1 %v2968_v20 }
 0x1a3   :  { %1537 = vmatmul.bf16.gmra.mxu2 %v2970_v21  ;;  %v3174_v21 = vperm.slane %v1867_v50, 0 }
 0x1a4   :  { %1626 = vmatmul.bf16.gmra.mxu3 %v2972_v23 }
 0x1a5   :  { %v1873_v53 = vadd.f32 %v3174_v21, %v2990_v10  ;;  %v3359_v10 = vld [vmem:[#allocation13_spill] sm:$0xff] }
 0x1a6   :  { %v1222_v46 = vpop.f32.mrf.mxu2  ;;  %v1046_v2 = vpop.f32.mrf.mxu0 }
 0x1a7   :  { %v1223_v48 = vadd.f32 %v1222_v46, %v1134_v45  ;;  %v1311_v1 = vpop.f32.mrf.mxu3  ;;  %v1135_v3 = vpop.f32.mrf.mxu1 }
 0x1a8   :  { %v1136_v8 = vadd.f32 %v1135_v3, %v1046_v2  ;;  %v3360_v3 = vld [vmem:[#allocation17_spill] sm:$0xff] }
 0x1a9   :  { %v3166_v30 = vadd.f32 %v1311_v1, %v1223_v48 }
 0x1ae   :  { %v1224_v13 = vpop.f32.mrf.mxu2  ;;  %v1325_v36 = vpop.f32.mrf.mxu0 }
 0x1af   :  { %v1225_v15 = vadd.f32 %v1224_v13, %v1136_v8  ;;  %v1313_v22 = vpop.f32.mrf.mxu3  ;;  %v1414_v51 = vpop.f32.mrf.mxu1  ;;  %v1877_v8 = vadd.f32 %v3174_v21, %v3360_v3  ;;  %v3361_v13 = vld [vmem:[#allocation14_spill] sm:$0xff] }
 0x1b0   :  { %v1415_v20 = vadd.f32 %v1414_v51, %v1325_v36 }
 0x1b1   :  { %v3168_v17 = vadd.f32 %v1313_v22, %v1225_v15  ;;  %1364 = vmatmul.bf16.gmra.mxu0 %v2978_v40  ;;  %v3362_v15 = vld [vmem:[#allocation15_spill] sm:$0xff]  ;;  %v3363_v22 = vld [vmem:[#allocation16_spill] sm:$0xff] }
 0x1b2   :  { %1453 = vmatmul.bf16.gmra.mxu1 %v2980_v42  ;;  %v1875_v42 = vadd.f32 %v3174_v21, %v3000_v7 }
 0x1b3   :  { %1542 = vmatmul.bf16.gmra.mxu2 %v2982_v43 }
 0x1b4   :  { %1631 = vmatmul.bf16.gmra.mxu3 %v2984_v57  ;;  %v1937_v57 = vmul.f32 %v1873_v53, %v1873_v53  ;;  %v1939_v25 = vmul.f32 %v1875_v42, %v1875_v42 }
 0x1b6   :  { %v1503_v23 = vpop.f32.mrf.mxu2  ;;  %v1327_v35 = vpop.f32.mrf.mxu0 }
 0x1b7   :  { %v1504_v54 = vadd.f32 %v1503_v23, %v1415_v20  ;;  %v1592_v33 = vpop.f32.mrf.mxu3  ;;  %v1416_v55 = vpop.f32.mrf.mxu1  ;;  %v1941_v20 = vmul.f32 %v1877_v8, %v1877_v8 }
 0x1b8   :  { %v1417_v40 = vadd.f32 %v1416_v55, %v1327_v35 }
 0x1b9   :  { %v1593_v41 = vadd.f32 %v1592_v33, %v1504_v54 }
 0x1bb   :  { %v1874_v43 = vadd.f32 %v3176_v34, %v1593_v41 }
 0x1bd   :  { %v1938_v60 = vmul.f32 %v1874_v43, %v1874_v43 }
 0x1be   :  { %v1505_v9 = vpop.f32.mrf.mxu2  ;;  %v1330_v45 = vpop.f32.mrf.mxu0 }
 0x1bf   :  { %v2001_v26 = vadd.f32 %v1938_v60, %v1937_v57  ;;  %v1506_v27 = vadd.f32 %v1505_v9, %v1417_v40  ;;  %v1594_v37 = vpop.f32.mrf.mxu3  ;;  %v1419_v46 = vpop.f32.mrf.mxu1  ;;  %v3364_v40 = vld [vmem:[#allocation22_spill] sm:$0xff] }
 0x1c0   :  { %v1420_v2 = vadd.f32 %v1419_v46, %v1330_v45  ;;  %v1879_v42 = vadd.f32 %v3174_v21, %v3364_v40 }
 0x1c1   :  { %v2002_v48 = vadd.f32 %v2001_v26, %v1939_v25  ;;  %v1595_v1 = vadd.f32 %v1594_v37, %v1506_v27  ;;  %1369 = vmatmul.bf16.gmra.mxu0 %v3359_v10  ;;  %v3366_v10 = vld [vmem:[#allocation23_spill] sm:$0xff] }
 0x1c2   :  { %1458 = vmatmul.bf16.gmra.mxu1 %v3361_v13  ;;  %v1943_v9 = vmul.f32 %v1879_v42, %v1879_v42  ;;  %v1881_v3 = vadd.f32 %v3174_v21, %v3366_v10  ;;  %v3368_v13 = vld [vmem:[#allocation20_spill] sm:$0xff] }
 0x1c3   :  { %v1876_v7 = vadd.f32 %v3176_v34, %v1595_v1  ;;  %1547 = vmatmul.bf16.gmra.mxu2 %v3362_v15  ;;  %v3369_v15 = vld [vmem:[#allocation21_spill] sm:$0xff] }
 0x1c4   :  { %1636 = vmatmul.bf16.gmra.mxu3 %v3363_v22 }
 0x1c5   :  { %v1940_v36 = vmul.f32 %v1876_v7, %v1876_v7  ;;  %v3367_v7 = vld [vmem:[#allocation19_spill] sm:$0xff] }
 0x1c6   :  { %v1508_v51 = vpop.f32.mrf.mxu2  ;;  %v1332_v33 = vpop.f32.mrf.mxu0 }
 0x1c7   :  { %v2003_v50 = vadd.f32 %v2002_v48, %v1940_v36  ;;  %v1509_v23 = vadd.f32 %v1508_v51, %v1420_v2  ;;  %v1597_v54 = vpop.f32.mrf.mxu3  ;;  %v1421_v35 = vpop.f32.mrf.mxu1  ;;  %v3365_v2 = vld [vmem:[#allocation18_spill] sm:$0xff]  ;;  %v1945_v51 = vmul.f32 %v1881_v3, %v1881_v3 }
 0x1c8   :  { %v1422_v41 = vadd.f32 %v1421_v35, %v1332_v33 }
 0x1c9   :  { %v1598_v55 = vadd.f32 %v1597_v54, %v1509_v23  ;;  %v2004_v53 = vadd.f32 %v2003_v50, %v1941_v20 }
 0x1cb   :  { %v1878_v43 = vadd.f32 %v3176_v34, %v1598_v55 }
 0x1cd   :  { %v1942_v57 = vmul.f32 %v1878_v43, %v1878_v43 }
 0x1ce   :  { %v1510_v60 = vpop.f32.mrf.mxu2  ;;  %v1335_v37 = vpop.f32.mrf.mxu0 }
 0x1cf   :  { %v2005_v25 = vadd.f32 %v2004_v53, %v1942_v57  ;;  %v1511_v26 = vadd.f32 %v1510_v60, %v1422_v41  ;;  %v1599_v27 = vpop.f32.mrf.mxu3  ;;  %v1424_v45 = vpop.f32.mrf.mxu1  ;;  %v3370_v41 = vld [vmem:[#allocation28_spill] sm:$0xff] }
 0x1d0   :  { %v1425_v1 = vadd.f32 %v1424_v45, %v1335_v37  ;;  %v1883_v40 = vadd.f32 %v3174_v21, %v3370_v41 }
 0x1d1   :  { %v2006_v46 = vadd.f32 %v2005_v25, %v1943_v9  ;;  %v1600_v48 = vadd.f32 %v1599_v27, %v1511_v26  ;;  %1374 = vmatmul.bf16.gmra.mxu0 %v3365_v2  ;;  %v3372_v2 = vld [vmem:[#allocation29_spill] sm:$0xff] }
 0x1d2   :  { %1463 = vmatmul.bf16.gmra.mxu1 %v3367_v7  ;;  %v1947_v60 = vmul.f32 %v1883_v40, %v1883_v40  ;;  %v1885_v10 = vadd.f32 %v3174_v21, %v3372_v2  ;;  %v3374_v7 = vld [vmem:[#allocation26_spill] sm:$0xff] }
 0x1d3   :  { %v1880_v8 = vadd.f32 %v3176_v34, %v1600_v48  ;;  %1552 = vmatmul.bf16.gmra.mxu2 %v3368_v13  ;;  %v3375_v13 = vld [vmem:[#allocation27_spill] sm:$0xff] }
 0x1d4   :  { %1641 = vmatmul.bf16.gmra.mxu3 %v3369_v15 }
 0x1d5   :  { %v1944_v22 = vmul.f32 %v1880_v8, %v1880_v8  ;;  %v3373_v8 = vld [vmem:[#allocation25_spill] sm:$0xff] }
 0x1d6   :  { %v1513_v36 = vpop.f32.mrf.mxu2  ;;  %v1337_v54 = vpop.f32.mrf.mxu0 }
 0x1d7   :  { %v2007_v20 = vadd.f32 %v2006_v46, %v1944_v22  ;;  %v1514_v50 = vadd.f32 %v1513_v36, %v1425_v1  ;;  %v1602_v23 = vpop.f32.mrf.mxu3  ;;  %v1426_v33 = vpop.f32.mrf.mxu1  ;;  %v3371_v1 = vld [vmem:[#allocation24_spill] sm:$0xff]  ;;  %v1949_v36 = vmul.f32 %v1885_v10, %v1885_v10 }
 0x1d8   :  { %v1427_v53 = vadd.f32 %v1426_v33, %v1337_v54 }
 0x1d9   :  { %v1603_v35 = vadd.f32 %v1602_v23, %v1514_v50  ;;  %v2008_v55 = vadd.f32 %v2007_v20, %v1945_v51 }
 0x1db   :  { %v1882_v42 = vadd.f32 %v3176_v34, %v1603_v35 }
 0x1dd   :  { %v1946_v43 = vmul.f32 %v1882_v42, %v1882_v42 }
 0x1de   :  { %v1515_v57 = vpop.f32.mrf.mxu2  ;;  %v1340_v27 = vpop.f32.mrf.mxu0 }
 0x1df   :  { %v2009_v9 = vadd.f32 %v2008_v55, %v1946_v43  ;;  %v1516_v25 = vadd.f32 %v1515_v57, %v1427_v53  ;;  %v1604_v26 = vpop.f32.mrf.mxu3  ;;  %v1429_v37 = vpop.f32.mrf.mxu1  ;;  %v3376_v53 = vld [vmem:[#allocation34_spill] sm:$0xff] }
 0x1e0   :  { %v1430_v48 = vadd.f32 %v1429_v37, %v1340_v27  ;;  %v1887_v41 = vadd.f32 %v3174_v21, %v3376_v53 }
 0x1e1   :  { %v2010_v45 = vadd.f32 %v2009_v9, %v1947_v60  ;;  %v1605_v46 = vadd.f32 %v1604_v26, %v1516_v25  ;;  %1379 = vmatmul.bf16.gmra.mxu0 %v3371_v1  ;;  %v3378_v1 = vld [vmem:[#allocation35_spill] sm:$0xff] }
 0x1e2   :  { %1468 = vmatmul.bf16.gmra.mxu1 %v3373_v8  ;;  %v1951_v57 = vmul.f32 %v1887_v41, %v1887_v41  ;;  %v1889_v2 = vadd.f32 %v3174_v21, %v3378_v1  ;;  %v3380_v8 = vld [vmem:[#allocation32_spill] sm:$0xff] }
 0x1e3   :  { %v1884_v3 = vadd.f32 %v3176_v34, %v1605_v46  ;;  %1557 = vmatmul.bf16.gmra.mxu2 %v3374_v7  ;;  %v3381_v7 = vld [vmem:[#allocation33_spill] sm:$0xff] }
 0x1e4   :  { %1646 = vmatmul.bf16.gmra.mxu3 %v3375_v13 }
 0x1e5   :  { %v1948_v15 = vmul.f32 %v1884_v3, %v1884_v3  ;;  %v3379_v3 = vld [vmem:[#allocation31_spill] sm:$0xff] }
 0x1e6   :  { %v1518_v22 = vpop.f32.mrf.mxu2  ;;  %v1342_v23 = vpop.f32.mrf.mxu0 }
 0x1e7   :  { %v2011_v51 = vadd.f32 %v2010_v45, %v1948_v15  ;;  %v1519_v20 = vadd.f32 %v1518_v22, %v1430_v48  ;;  %v1607_v50 = vpop.f32.mrf.mxu3  ;;  %v1431_v54 = vpop.f32.mrf.mxu1  ;;  %v3377_v48 = vld [vmem:[#allocation30_spill] sm:$0xff]  ;;  %v1953_v22 = vmul.f32 %v1889_v2, %v1889_v2 }
 0x1e8   :  { %v1432_v55 = vadd.f32 %v1431_v54, %v1342_v23 }
 0x1e9   :  { %v1608_v33 = vadd.f32 %v1607_v50, %v1519_v20  ;;  %v2012_v35 = vadd.f32 %v2011_v51, %v1949_v36 }
 0x1eb   :  { %v1886_v40 = vadd.f32 %v3176_v34, %v1608_v33 }
 0x1ed   :  { %v1950_v42 = vmul.f32 %v1886_v40, %v1886_v40 }
 0x1ee   :  { %v1520_v43 = vpop.f32.mrf.mxu2  ;;  %v1345_v26 = vpop.f32.mrf.mxu0 }
 0x1ef   :  { %v2013_v60 = vadd.f32 %v2012_v35, %v1950_v42  ;;  %v1521_v9 = vadd.f32 %v1520_v43, %v1432_v55  ;;  %v1609_v25 = vpop.f32.mrf.mxu3  ;;  %v1434_v27 = vpop.f32.mrf.mxu1  ;;  %v1891_v55 = vadd.f32 %v3174_v21, %v3064_v63 }
 0x1f0   :  { %v1435_v46 = vadd.f32 %v1434_v27, %v1345_v26 }
 0x1f1   :  { %v2014_v37 = vadd.f32 %v2013_v60, %v1951_v57  ;;  %v1610_v45 = vadd.f32 %v1609_v25, %v1521_v9  ;;  %1384 = vmatmul.bf16.gmra.mxu0 %v3377_v48  ;;  %v1955_v42 = vmul.f32 %v1891_v55, %v1891_v55 }
 0x1f2   :  { %1473 = vmatmul.bf16.gmra.mxu1 %v3379_v3 }
 0x1f3   :  { %v1888_v10 = vadd.f32 %v3176_v34, %v1610_v45  ;;  %1562 = vmatmul.bf16.gmra.mxu2 %v3380_v8  ;;  %v1893_v45 = vadd.f32 %v3174_v21, %v3070_v62  ;;  %v3383_v62 = vld [vmem:[#allocation41_spill] sm:$0xff] }
 0x1f4   :  { %1651 = vmatmul.bf16.gmra.mxu3 %v3381_v7 }
 0x1f5   :  { %v1952_v13 = vmul.f32 %v1888_v10, %v1888_v10  ;;  %v1957_v2 = vmul.f32 %v1893_v45, %v1893_v45 }
 0x1f6   :  { %v1523_v15 = vpop.f32.mrf.mxu2  ;;  %v1347_v50 = vpop.f32.mrf.mxu0 }
 0x1f7   :  { %v2015_v36 = vadd.f32 %v2014_v37, %v1952_v13  ;;  %v1524_v51 = vadd.f32 %v1523_v15, %v1435_v46  ;;  %v1612_v20 = vpop.f32.mrf.mxu3  ;;  %v1436_v23 = vpop.f32.mrf.mxu1  ;;  %v3382_v46 = vld [vmem:[#allocation36_spill] sm:$0xff] }
 0x1f8   :  { %v1437_v35 = vadd.f32 %v1436_v23, %v1347_v50 }
 0x1f9   :  { %v1613_v54 = vadd.f32 %v1612_v20, %v1524_v51  ;;  %v2016_v33 = vadd.f32 %v2015_v36, %v1953_v22  ;;  %v1895_v36 = vadd.f32 %v3174_v21, %v3383_v62 }
 0x1fb   :  { %v1890_v53 = vadd.f32 %v3176_v34, %v1613_v54  ;;  %v1959_v20 = vmul.f32 %v1895_v36, %v1895_v36 }
 0x1fd   :  { %v1954_v41 = vmul.f32 %v1890_v53, %v1890_v53 }
 0x1fe   :  { %v1525_v40 = vpop.f32.mrf.mxu2  ;;  %v1350_v9 = vpop.f32.mrf.mxu0 }
 0x1ff   :  { %v2017_v43 = vadd.f32 %v2016_v33, %v1954_v41  ;;  %v1526_v57 = vadd.f32 %v1525_v40, %v1437_v35  ;;  %v1614_v60 = vpop.f32.mrf.mxu3  ;;  %v1439_v25 = vpop.f32.mrf.mxu1  ;;  %v3384_v40 = vld [vmem:[#allocation37_spill] sm:$0xff] }
 0x200   :  { %v1440_v37 = vadd.f32 %v1439_v25, %v1350_v9  ;;  %v3387_v9 = vld [vmem:[#allocation40_spill] sm:$0xff] }
 0x201   :  { %v1615_v26 = vadd.f32 %v1614_v60, %v1526_v57  ;;  %v2018_v27 = vadd.f32 %v2017_v43, %v1955_v42  ;;  %1389 = vmatmul.bf16.gmra.mxu0 %v3056_v39  ;;  %v1897_v42 = vadd.f32 %v3174_v21, %v3086_v4  ;;  %v3385_v57 = vld [vmem:[#allocation38_spill] sm:$0xff]  ;;  %v3386_v60 = vld [vmem:[#allocation39_spill] sm:$0xff]  ;;  %v1899_v4 = vadd.f32 %v3174_v21, %v3096_v38 }
 0x202   :  { %1478 = vmatmul.bf16.gmra.mxu1 %v3058_v29 }
 0x203   :  { %v1892_v63 = vadd.f32 %v3176_v34, %v1615_v26  ;;  %1567 = vmatmul.bf16.gmra.mxu2 %v3060_v31 }
 0x204   :  { %1656 = vmatmul.bf16.gmra.mxu3 %v3382_v46 }
 0x205   :  { %v1956_v48 = vmul.f32 %v1892_v63, %v1892_v63 }
 0x206   :  { %v1528_v1 = vpop.f32.mrf.mxu2  ;;  %v1352_v7 = vpop.f32.mrf.mxu0 }
 0x207   :  { %v2019_v10 = vadd.f32 %v2018_v27, %v1956_v48  ;;  %v1529_v3 = vadd.f32 %v1528_v1, %v1440_v37  ;;  %v1617_v8 = vpop.f32.mrf.mxu3  ;;  %v1441_v13 = vpop.f32.mrf.mxu1  ;;  %v1961_v27 = vmul.f32 %v1897_v42, %v1897_v42 }
 0x208   :  { %v1442_v22 = vadd.f32 %v1441_v13, %v1352_v7  ;;  %v1963_v13 = vmul.f32 %v1899_v4, %v1899_v4 }
 0x209   :  { %v1618_v39 = vadd.f32 %v1617_v8, %v1529_v3  ;;  %v2020_v15 = vadd.f32 %v2019_v10, %v1957_v2 }
 0x20b   :  { %v1894_v29 = vadd.f32 %v3176_v34, %v1618_v39 }
 0x20d   :  { %v1958_v51 = vmul.f32 %v1894_v29, %v1894_v29 }
 0x20e   :  { %v1530_v31 = vpop.f32.mrf.mxu2  ;;  %v1355_v33 = vpop.f32.mrf.mxu0 }
 0x20f   :  { %v2021_v50 = vadd.f32 %v2020_v15, %v1958_v51  ;;  %v1531_v23 = vadd.f32 %v1530_v31, %v1442_v22  ;;  %v1619_v54 = vpop.f32.mrf.mxu3  ;;  %v1444_v35 = vpop.f32.mrf.mxu1 }
 0x210   :  { %v1445_v41 = vadd.f32 %v1444_v35, %v1355_v33 }
 0x211   :  { %v1620_v55 = vadd.f32 %v1619_v54, %v1531_v23  ;;  %v2022_v53 = vadd.f32 %v2021_v50, %v1959_v20  ;;  %1394 = vmatmul.bf16.gmra.mxu0 %v3384_v40  ;;  %v1901_v20 = vadd.f32 %v3174_v21, %v3102_v18  ;;  %v1903_v18 = vadd.f32 %v3174_v21, %v3104_v11 }
 0x212   :  { %1483 = vmatmul.bf16.gmra.mxu1 %v3385_v57 }
 0x213   :  { %v1896_v43 = vadd.f32 %v3176_v34, %v1620_v55  ;;  %1572 = vmatmul.bf16.gmra.mxu2 %v3386_v60  ;;  %v1965_v54 = vmul.f32 %v1901_v20, %v1901_v20  ;;  %v1967_v57 = vmul.f32 %v1903_v18, %v1903_v18 }
 0x214   :  { %1661 = vmatmul.bf16.gmra.mxu3 %v3387_v9 }
 0x215   :  { %v1960_v25 = vmul.f32 %v1896_v43, %v1896_v43 }
 0x216   :  { %v1533_v26 = vpop.f32.mrf.mxu2  ;;  %v1357_v46 = vpop.f32.mrf.mxu0 }
 0x217   :  { %v2023_v37 = vadd.f32 %v2022_v53, %v1960_v25  ;;  %v1534_v45 = vadd.f32 %v1533_v26, %v1445_v41  ;;  %v1622_v63 = vpop.f32.mrf.mxu3  ;;  %v1446_v48 = vpop.f32.mrf.mxu1 }
 0x218   :  { %v1447_v10 = vadd.f32 %v1446_v48, %v1357_v46 }
 0x219   :  { %v1623_v1 = vadd.f32 %v1622_v63, %v1534_v45  ;;  %v2024_v2 = vadd.f32 %v2023_v37, %v1961_v27  ;;  %v1905_v45 = vadd.f32 %v3174_v21, %v3110_v19 }
 0x21b   :  { %v1898_v3 = vadd.f32 %v3176_v34, %v1623_v1  ;;  %v1969_v1 = vmul.f32 %v1905_v45, %v1905_v45 }
 0x21d   :  { %v1962_v8 = vmul.f32 %v1898_v3, %v1898_v3 }
 0x21e   :  { %v1535_v7 = vpop.f32.mrf.mxu2  ;;  %v1360_v62 = vpop.f32.mrf.mxu0 }
 0x21f   :  { %v2025_v39 = vadd.f32 %v2024_v2, %v1962_v8  ;;  %v1536_v15 = vadd.f32 %v1535_v7, %v1447_v10  ;;  %v1624_v22 = vpop.f32.mrf.mxu3  ;;  %v1449_v36 = vpop.f32.mrf.mxu1 }
 0x220   :  { %v1450_v31 = vadd.f32 %v1449_v36, %v1360_v62 }
 0x221   :  { %v1625_v29 = vadd.f32 %v1624_v22, %v1536_v15  ;;  %v2026_v51 = vadd.f32 %v2025_v39, %v1963_v13  ;;  %1399 = vmatmul.bf16.gmra.mxu0 %v3088_v58  ;;  %v1907_v39 = vadd.f32 %v3174_v21, %v3112_v47 }
 0x222   :  { %1488 = vmatmul.bf16.gmra.mxu1 %v3090_v56 }
 0x223   :  { %v1900_v38 = vadd.f32 %v3176_v34, %v1625_v29  ;;  %1577 = vmatmul.bf16.gmra.mxu2 %v3092_v6  ;;  %v1971_v36 = vmul.f32 %v1907_v39, %v1907_v39 }
 0x224   :  { %1666 = vmatmul.bf16.gmra.mxu3 %v3094_v59 }
 0x225   :  { %v1964_v50 = vmul.f32 %v1900_v38, %v1900_v38 }
 0x226   :  { %v1538_v23 = vpop.f32.mrf.mxu2  ;;  %v1362_v53 = vpop.f32.mrf.mxu0 }
 0x227   :  { %v2027_v33 = vadd.f32 %v2026_v51, %v1964_v50  ;;  %v1539_v35 = vadd.f32 %v1538_v23, %v1450_v31  ;;  %v1627_v55 = vpop.f32.mrf.mxu3  ;;  %v1451_v41 = vpop.f32.mrf.mxu1 }
 0x228   :  { %v1452_v42 = vadd.f32 %v1451_v41, %v1362_v53 }
 0x229   :  { %v1628_v58 = vadd.f32 %v1627_v55, %v1539_v35  ;;  %v2028_v40 = vadd.f32 %v2027_v33, %v1965_v54  ;;  %v1909_v54 = vadd.f32 %v3174_v21, %v3118_v61 }
 0x22b   :  { %v1902_v56 = vadd.f32 %v3176_v34, %v1628_v58  ;;  %v1973_v53 = vmul.f32 %v1909_v54, %v1909_v54 }
 0x22d   :  { %v1966_v43 = vmul.f32 %v1902_v56, %v1902_v56 }
 0x22e   :  { %v1540_v6 = vpop.f32.mrf.mxu2  ;;  %v1365_v25 = vpop.f32.mrf.mxu0 }
 0x22f   :  { %v2029_v59 = vadd.f32 %v2028_v40, %v1966_v43  ;;  %v1541_v60 = vadd.f32 %v1540_v6, %v1452_v42  ;;  %v1629_v9 = vpop.f32.mrf.mxu3  ;;  %v1454_v26 = vpop.f32.mrf.mxu1  ;;  %v1911_v6 = vadd.f32 %v3174_v21, %v3120_v12 }
 0x230   :  { %v1455_v46 = vadd.f32 %v1454_v26, %v1365_v25 }
 0x231   :  { %v1630_v27 = vadd.f32 %v1629_v9, %v1541_v60  ;;  %v2030_v37 = vadd.f32 %v2029_v59, %v1967_v57  ;;  %v1975_v9 = vmul.f32 %v1911_v6, %v1911_v6  ;;  %v1919_v6 = vadd.f32 %v3174_v21, %v3136_v49 }
 0x233   :  { %v1904_v63 = vadd.f32 %v3176_v34, %v1630_v27 }
 0x235   :  { %v1968_v48 = vmul.f32 %v1904_v63, %v1904_v63 }
 0x236   :  { %v1543_v11 = vpop.f32.mrf.mxu2  ;;  %v1367_v3 = vpop.f32.mrf.mxu0 }
 0x237   :  { %v2031_v2 = vadd.f32 %v2030_v37, %v1968_v48  ;;  %v1544_v10 = vadd.f32 %v1543_v11, %v1455_v46  ;;  %v1632_v4 = vpop.f32.mrf.mxu3  ;;  %v1456_v8 = vpop.f32.mrf.mxu1  ;;  %v1913_v48 = vadd.f32 %v3174_v21, %v3126_v52 }
 0x238   :  { %v1457_v19 = vadd.f32 %v1456_v8, %v1367_v3 }
 0x239   :  { %v1633_v7 = vadd.f32 %v1632_v4, %v1544_v10  ;;  %v2032_v13 = vadd.f32 %v2031_v2, %v1969_v1  ;;  %v1977_v10 = vmul.f32 %v1913_v48, %v1913_v48 }
 0x23b   :  { %v1906_v15 = vadd.f32 %v3176_v34, %v1633_v7 }
 0x23d   :  { %v1970_v22 = vmul.f32 %v1906_v15, %v1906_v15 }
 0x23e   :  { %v1545_v62 = vpop.f32.mrf.mxu2  ;;  %v1370_v20 = vpop.f32.mrf.mxu0 }
 0x23f   :  { %v2033_v29 = vadd.f32 %v2032_v13, %v1970_v22  ;;  %v1546_v51 = vadd.f32 %v1545_v62, %v1457_v19  ;;  %v1634_v31 = vpop.f32.mrf.mxu3  ;;  %v1459_v38 = vpop.f32.mrf.mxu1  ;;  %v1915_v22 = vadd.f32 %v3174_v21, %v3128_v24 }
 0x240   :  { %v1460_v35 = vadd.f32 %v1459_v38, %v1370_v20 }
 0x241   :  { %v1635_v50 = vadd.f32 %v1634_v31, %v1546_v51  ;;  %v2034_v23 = vadd.f32 %v2033_v29, %v1971_v36  ;;  %v1979_v29 = vmul.f32 %v1915_v22, %v1915_v22 }
 0x243   :  { %v1908_v33 = vadd.f32 %v3176_v34, %v1635_v50 }
 0x245   :  { %v1972_v47 = vmul.f32 %v1908_v33, %v1908_v33  ;;  %v1917_v33 = vadd.f32 %v3174_v21, %v3134_v5 }
 0x246   :  { %v1548_v55 = vpop.f32.mrf.mxu2  ;;  %v1372_v42 = vpop.f32.mrf.mxu0 }
 0x247   :  { %v2035_v41 = vadd.f32 %v2034_v23, %v1972_v47  ;;  %v1549_v58 = vadd.f32 %v1548_v55, %v1460_v35  ;;  %v1637_v40 = vpop.f32.mrf.mxu3  ;;  %v1461_v18 = vpop.f32.mrf.mxu1 }
 0x248   :  { %v1462_v61 = vadd.f32 %v1461_v18, %v1372_v42 }
 0x249   :  { %v1638_v56 = vadd.f32 %v1637_v40, %v1549_v58  ;;  %v2036_v43 = vadd.f32 %v2035_v41, %v1973_v53  ;;  %v1981_v53 = vmul.f32 %v1917_v33, %v1917_v33 }
 0x24b   :  { %v1910_v57 = vadd.f32 %v3176_v34, %v1638_v56 }
 0x24d   :  { %v1974_v59 = vmul.f32 %v1910_v57, %v1910_v57 }
 0x24e   :  { %v1550_v60 = vpop.f32.mrf.mxu2  ;;  %v1375_v37 = vpop.f32.mrf.mxu0 }
 0x24f   :  { %v2037_v25 = vadd.f32 %v2036_v43, %v1974_v59  ;;  %v1551_v26 = vadd.f32 %v1550_v60, %v1462_v61  ;;  %v1639_v27 = vpop.f32.mrf.mxu3  ;;  %v1464_v45 = vpop.f32.mrf.mxu1  ;;  %v1983_v60 = vmul.f32 %v1919_v6, %v1919_v6 }
 0x250   :  { %v1465_v1 = vadd.f32 %v1464_v45, %v1375_v37 }
 0x251   :  { %v1640_v63 = vadd.f32 %v1639_v27, %v1551_v26  ;;  %v2038_v46 = vadd.f32 %v2037_v25, %v1975_v9 }
 0x253   :  { %v1912_v11 = vadd.f32 %v3176_v34, %v1640_v63 }
 0x255   :  { %v1976_v12 = vmul.f32 %v1912_v11, %v1912_v11 }
 0x256   :  { %v1553_v2 = vpop.f32.mrf.mxu2  ;;  %v1377_v7 = vpop.f32.mrf.mxu0 }
 0x257   :  { %v2039_v4 = vadd.f32 %v2038_v46, %v1976_v12  ;;  %v1554_v3 = vadd.f32 %v1553_v2, %v1465_v1  ;;  %v1642_v8 = vpop.f32.mrf.mxu3  ;;  %v1466_v13 = vpop.f32.mrf.mxu1  ;;  %v1921_v46 = vadd.f32 %v3174_v21, %v3142_v28 }
 0x258   :  { %v1467_v52 = vadd.f32 %v1466_v13, %v1377_v7 }
 0x259   :  { %v1643_v39 = vadd.f32 %v1642_v8, %v1554_v3  ;;  %v2040_v15 = vadd.f32 %v2039_v4, %v1977_v10  ;;  %v1985_v12 = vmul.f32 %v1921_v46, %v1921_v46 }
 0x25b   :  { %v1914_v19 = vadd.f32 %v3176_v34, %v1643_v39  ;;  %v1923_v39 = vadd.f32 %v3174_v21, %v3144_v0 }
 0x25d   :  { %v1978_v62 = vmul.f32 %v1914_v19, %v1914_v19 }
 0x25e   :  { %v1555_v36 = vpop.f32.mrf.mxu2  ;;  %v1380_v38 = vpop.f32.mrf.mxu0 }
 0x25f   :  { %v2041_v51 = vadd.f32 %v2040_v15, %v1978_v62  ;;  %v1556_v31 = vadd.f32 %v1555_v36, %v1467_v52  ;;  %v1644_v20 = vpop.f32.mrf.mxu3  ;;  %v1469_v50 = vpop.f32.mrf.mxu1  ;;  %v1987_v62 = vmul.f32 %v1923_v39, %v1923_v39 }
 0x260   :  { %v1470_v47 = vadd.f32 %v1469_v50, %v1380_v38  ;;  %v1925_v50 = vadd.f32 %v3174_v21, %v3150_v14 }
 0x261   :  { %v1645_v23 = vadd.f32 %v1644_v20, %v1556_v31  ;;  %v2042_v54 = vadd.f32 %v2041_v51, %v1979_v29 }
 0x263   :  { %v1916_v35 = vadd.f32 %v3176_v34, %v1645_v23 }
 0x265   :  { %v1980_v24 = vmul.f32 %v1916_v35, %v1916_v35  ;;  %v1989_v35 = vmul.f32 %v1925_v50, %v1925_v50 }
 0x266   :  { %v1558_v55 = vpop.f32.mrf.mxu2  ;;  %v1382_v42 = vpop.f32.mrf.mxu0 }
 0x267   :  { %v2043_v41 = vadd.f32 %v2042_v54, %v1980_v24  ;;  %v1559_v58 = vadd.f32 %v1558_v55, %v1470_v47  ;;  %v1647_v40 = vpop.f32.mrf.mxu3  ;;  %v1471_v18 = vpop.f32.mrf.mxu1 }
 0x268   :  { %v1472_v5 = vadd.f32 %v1471_v18, %v1382_v42  ;;  %v1927_v42 = vadd.f32 %v3174_v21, %v3152_v32 }
 0x269   :  { %v1648_v56 = vadd.f32 %v1647_v40, %v1559_v58  ;;  %v2044_v43 = vadd.f32 %v2043_v41, %v1981_v53 }
 0x26a   :  { %v1991_v6 = vmul.f32 %v1927_v42, %v1927_v42 }
 0x26b   :  { %v1918_v57 = vadd.f32 %v3176_v34, %v1648_v56 }
 0x26d   :  { %v1982_v59 = vmul.f32 %v1918_v57, %v1918_v57 }
 0x26e   :  { %v1560_v61 = vpop.f32.mrf.mxu2  ;;  %v1385_v27 = vpop.f32.mrf.mxu0 }
 0x26f   :  { %v2045_v9 = vadd.f32 %v2044_v43, %v1982_v59  ;;  %v1561_v25 = vadd.f32 %v1560_v61, %v1472_v5  ;;  %v1649_v26 = vpop.f32.mrf.mxu3  ;;  %v1474_v37 = vpop.f32.mrf.mxu1 }
 0x270   :  { %v1475_v11 = vadd.f32 %v1474_v37, %v1385_v27 }
 0x271   :  { %v1650_v45 = vadd.f32 %v1649_v26, %v1561_v25  ;;  %v2046_v63 = vadd.f32 %v2045_v9, %v1983_v60  ;;  %v1929_v26 = vadd.f32 %v3174_v21, %v3158_v16 }
 0x273   :  { %v1920_v48 = vadd.f32 %v3176_v34, %v1650_v45 }
 0x275   :  { %v1984_v49 = vmul.f32 %v1920_v48, %v1920_v48 }
 0x276   :  { %v1563_v1 = vpop.f32.mrf.mxu2  ;;  %v1387_v3 = vpop.f32.mrf.mxu0 }
 0x277   :  { %v2047_v2 = vadd.f32 %v2046_v63, %v1984_v49  ;;  %v1564_v10 = vadd.f32 %v1563_v1, %v1475_v11  ;;  %v1652_v4 = vpop.f32.mrf.mxu3  ;;  %v1476_v8 = vpop.f32.mrf.mxu1  ;;  %v1993_v63 = vmul.f32 %v1929_v26, %v1929_v26 }
 0x278   :  { %v1477_v28 = vadd.f32 %v1476_v8, %v1387_v3 }
 0x279   :  { %v1653_v7 = vadd.f32 %v1652_v4, %v1564_v10  ;;  %v2048_v13 = vadd.f32 %v2047_v2, %v1985_v12  ;;  %v1931_v10 = vadd.f32 %v3174_v21, %v3160_v44 }
 0x27b   :  { %v1922_v15 = vadd.f32 %v3176_v34, %v1653_v7  ;;  %v1995_v7 = vmul.f32 %v1931_v10, %v1931_v10 }
 0x27d   :  { %v1986_v22 = vmul.f32 %v1922_v15, %v1922_v15 }
 0x27e   :  { %v1565_v19 = vpop.f32.mrf.mxu2  ;;  %v1390_v51 = vpop.f32.mrf.mxu0 }
 0x27f   :  { %v2049_v52 = vadd.f32 %v2048_v13, %v1986_v22  ;;  %v1566_v36 = vadd.f32 %v1565_v19, %v1477_v28  ;;  %v1654_v29 = vpop.f32.mrf.mxu3  ;;  %v1479_v31 = vpop.f32.mrf.mxu1 }
 0x280   :  { %v1480_v54 = vadd.f32 %v1479_v31, %v1390_v51 }
 0x281   :  { %v1655_v20 = vadd.f32 %v1654_v29, %v1566_v36  ;;  %v2050_v38 = vadd.f32 %v2049_v52, %v1987_v62  ;;  %v1933_v52 = vadd.f32 %v3174_v21, %v3166_v30 }
 0x283   :  { %v1924_v23 = vadd.f32 %v3176_v34, %v1655_v20  ;;  %v1997_v31 = vmul.f32 %v1933_v52, %v1933_v52 }
 0x285   :  { %v1988_v0 = vmul.f32 %v1924_v23, %v1924_v23 }
 0x286   :  { %v1568_v33 = vpop.f32.mrf.mxu2  ;;  %v1392_v53 = vpop.f32.mrf.mxu0 }
 0x287   :  { %v2051_v47 = vadd.f32 %v2050_v38, %v1988_v0  ;;  %v1569_v24 = vadd.f32 %v1568_v33, %v1480_v54  ;;  %v1657_v55 = vpop.f32.mrf.mxu3  ;;  %v1481_v41 = vpop.f32.mrf.mxu1 }
 0x288   :  { %v1482_v14 = vadd.f32 %v1481_v41, %v1392_v53 }
 0x289   :  { %v1658_v58 = vadd.f32 %v1657_v55, %v1569_v24  ;;  %v2052_v40 = vadd.f32 %v2051_v47, %v1989_v35  ;;  %v1935_v35 = vadd.f32 %v3174_v21, %v3168_v17 }
 0x28b   :  { %v1926_v18 = vadd.f32 %v3176_v34, %v1658_v58  ;;  %v1999_v41 = vmul.f32 %v1935_v35, %v1935_v35 }
 0x28d   :  { %v1990_v56 = vmul.f32 %v1926_v18, %v1926_v18 }
 0x28e   :  { %v1570_v43 = vpop.f32.mrf.mxu2  ;;  %v1395_v61 = vpop.f32.mrf.mxu0 }
 0x28f   :  { %v2053_v57 = vadd.f32 %v2052_v40, %v1990_v56  ;;  %v1571_v59 = vadd.f32 %v1570_v43, %v1482_v14  ;;  %v1659_v5 = vpop.f32.mrf.mxu3  ;;  %v1484_v60 = vpop.f32.mrf.mxu1 }
 0x290   :  { %v1485_v37 = vadd.f32 %v1484_v60, %v1395_v61 }
 0x291   :  { %v1660_v9 = vadd.f32 %v1659_v5, %v1571_v59  ;;  %v2054_v25 = vadd.f32 %v2053_v57, %v1991_v6 }
 0x293   :  { %v1928_v27 = vadd.f32 %v3176_v34, %v1660_v9 }
 0x295   :  { %v1992_v32 = vmul.f32 %v1928_v27, %v1928_v27 }
 0x296   :  { %v1573_v45 = vpop.f32.mrf.mxu2  ;;  %v1397_v49 = vpop.f32.mrf.mxu0 }
 0x297   :  { %v2055_v46 = vadd.f32 %v2054_v25, %v1992_v32  ;;  %v1574_v48 = vadd.f32 %v1573_v45, %v1485_v37  ;;  %v1662_v11 = vpop.f32.mrf.mxu3  ;;  %v1486_v1 = vpop.f32.mrf.mxu1 }
 0x298   :  { %v1487_v16 = vadd.f32 %v1486_v1, %v1397_v49 }
 0x299   :  { %v1663_v12 = vadd.f32 %v1662_v11, %v1574_v48  ;;  %v2056_v2 = vadd.f32 %v2055_v46, %v1993_v63 }
 0x29b   :  { %v1930_v4 = vadd.f32 %v3176_v34, %v1663_v12 }
 0x29d   :  { %v1994_v3 = vmul.f32 %v1930_v4, %v1930_v4 }
 0x29e   :  { %v1575_v8 = vpop.f32.mrf.mxu2  ;;  %v1400_v22 = vpop.f32.mrf.mxu0 }
 0x29f   :  { %v2057_v13 = vadd.f32 %v2056_v2, %v1994_v3  ;;  %v1576_v39 = vadd.f32 %v1575_v8, %v1487_v16  ;;  %v1664_v15 = vpop.f32.mrf.mxu3  ;;  %v1489_v28 = vpop.f32.mrf.mxu1 }
 0x2a0   :  { %v1490_v29 = vadd.f32 %v1489_v28, %v1400_v22 }
 0x2a1   :  { %v1665_v19 = vadd.f32 %v1664_v15, %v1576_v39  ;;  %v2058_v62 = vadd.f32 %v2057_v13, %v1995_v7 }
 0x2a3   :  { %v1932_v36 = vadd.f32 %v3176_v34, %v1665_v19 }
 0x2a5   :  { %v1996_v44 = vmul.f32 %v1932_v36, %v1932_v36 }
 0x2a6   :  { %v1578_v51 = vpop.f32.mrf.mxu2  ;;  %v1402_v0 = vpop.f32.mrf.mxu0 }
 0x2a7   :  { %v2059_v20 = vadd.f32 %v2058_v62, %v1996_v44  ;;  %v1579_v38 = vadd.f32 %v1578_v51, %v1490_v29  ;;  %v1667_v50 = vpop.f32.mrf.mxu3  ;;  %v1491_v33 = vpop.f32.mrf.mxu1 }
 0x2a8   :  { %v1492_v30 = vadd.f32 %v1491_v33, %v1402_v0 }
 0x2a9   :  { %v1668_v23 = vadd.f32 %v1667_v50, %v1579_v38  ;;  %v2060_v54 = vadd.f32 %v2059_v20, %v1997_v31 }
 0x2ab   :  { %v1934_v47 = vadd.f32 %v3176_v34, %v1668_v23 }
 0x2ad   :  { %v1998_v24 = vmul.f32 %v1934_v47, %v1934_v47 }
 0x2ae   :  { %v1580_v55 = vpop.f32.mrf.mxu2 }
 0x2af   :  { %v1581_v53 = vadd.f32 %v1580_v55, %v1492_v30  ;;  %v2061_v58 = vadd.f32 %v2060_v54, %v1998_v24  ;;  %v1669_v40 = vpop.f32.mrf.mxu3 }
 0x2b1   :  { %v1670_v42 = vadd.f32 %v1669_v40, %v1581_v53  ;;  %v2062_v18 = vadd.f32 %v2061_v58, %v1999_v41 }
 0x2b3   :  { %v1936_v56 = vadd.f32 %v3176_v34, %v1670_v42 }
 0x2b5   :  { %v2000_v14 = vmul.f32 %v1936_v56, %v1936_v56 }
 0x2b7   :  { %v2063_v43 = vadd.f32 %v2062_v18, %v2000_v14 }
 0x2b9   :  { %2064 = vadd.xlane.f32.xlu0 %v2063_v43 }
 0x32c   :  { %v2065_v6 = vpop.xlane.xlu0 %2064 }
 0x32d   :  { %v2066_v57 = vrot.slane %v2065_v6, 4 }
 0x32f   :  { %v2067_v59 = vadd.f32 %v2066_v57, %v2065_v6 }
 0x331   :  { %v2068_v17 = vrot.slane %v2067_v59, 2 }
 0x333   :  { %v2069_v21 = vadd.f32 %v2068_v17, %v2067_v59 }
 0x335   :  { %v2070_v5 = vrot.slane %v2069_v21, 1 }
 0x337   :  { %v2071_v61 = vadd.f32 %v2070_v5, %v2069_v21 }
 0x339   :  { %2733 = vpush %v2071_v61 }
 0x36a   :  { %s2734_s6 = spop %2733 }
 0x36b   :  { %v2073_v34 = vstv %s2734_s6 }
 0x36c   :  { %2074 = vst [vmem:[#allocation9] sm:$0xff] %v2073_v34 }
 0x36d   :  { %2085 = dma.vmem_to_hbm [thread:$0]  %s2081_s2, 128, %s2083_s5, [#allocation5]  }
 0x36e   :  { %2843 = dma.done.wait [#allocation5], 128  }
 0x36f   :  { %2844 = vsyncadd [#allocation5], 4294967168 }
 0x370   :  { %2090 = vsyncpa [#allocation4], 1 }
 0x371   :  { %2091 = vsyncpa [#allocation7], 1 }
 0x372   :  { %2092 = vsyncpa [#allocation5], 1 }

</bundles_post_ra>
